<compile_context>
chip_gen: v7x
topology: tpu7x:2x2x1
jax: 0.10.0
libtpu: 0.0.40
codegen_flags: <defaults>
</compile_context>

<pallas_src>
import functools
import math

import jax
import jax.numpy as jnp
from jax.experimental import pallas as pl
from jax.experimental.pallas import tpu as pltpu

# ---- small config (stand-in for bert-large-cased: LINEAR_INPUT == HIDDEN) ----
BATCH = 2
SEQ = 8
HIDDEN = 32
HEADS = 4
HEAD_DIM = HIDDEN // HEADS
FFN = 64
LAYERS = 2
VOCAB = 100
TYPE_VOCAB = 2
MAX_POS = 16
LN_EPS = 1e-12


def _gelu(x):
    # tanh approximation of GELU (transcendentals go to the EUP slot).
    # TODO(synk): HF BERT uses erf-gelu; tanh approx matches to ~1e-3.
    return 0.5 * x * (1.0 + jnp.tanh(0.7978845608028654 * (x + 0.044715 * x * x * x)))


def _layernorm(x, g, b):
    mu = jnp.mean(x, axis=-1, keepdims=True)
    xc = x - mu
    var = jnp.mean(xc * xc, axis=-1, keepdims=True)
    return xc * jax.lax.rsqrt(var + LN_EPS) * g + b


# -------------------- fused encoder + pooler + head kernel --------------------
#
# grid = (B, LAYERS); axis 0 "parallel", axis 1 "arbitrary" (activation carried in
# a VMEM scratch across the layer axis).

def encoder_kernel(we_ref, pe_ref, te_ref, bias_ref, emb_g_ref, emb_b_ref,
                   wqkv_ref, bqkv_ref, wo_ref, bo_ref, ln1_g_ref, ln1_b_ref,
                   w1_ref, b1_ref, w2_ref, b2_ref, ln2_g_ref, ln2_b_ref,
                   pool_w_ref, pool_b_ref, out_w_ref, out_b_ref,
                   out_ref, x_vmem, *, scale):
    l = pl.program_id(1)

    # ---- embeddings + LN fused into the first layer step ----
    @pl.when(l == 0)
    def _():
        emb = we_ref[0] + pe_ref[0] + te_ref[0]                       # (S, H) f32
        x_vmem[...] = _layernorm(emb, emb_g_ref[...], emb_b_ref[...])

    x = x_vmem[...]                                                   # (S, H) f32
    xb = x.astype(jnp.bfloat16)

    # ---- fused QKV projection: one lane-dense MXU matmul instead of three ----
    qkv = jnp.dot(xb, wqkv_ref[0],
                  preferred_element_type=jnp.float32) + bqkv_ref[0]   # (S, 3H) f32

    # ---- attention: static per-head unroll, all data VMEM resident ----
    bias_row = bias_ref[0]                                            # (1, S) f32, hoisted
    ctx_parts = []
    for h in range(HEADS):
        q_h = (qkv[:, h * HEAD_DIM:(h + 1) * HEAD_DIM]
               * scale).astype(jnp.bfloat16)                          # fold 1/sqrt(d) into Q
        k_h = qkv[:, HIDDEN + h * HEAD_DIM:
                  HIDDEN + (h + 1) * HEAD_DIM].astype(jnp.bfloat16)
        v_h = qkv[:, 2 * HIDDEN + h * HEAD_DIM:
                  2 * HIDDEN + (h + 1) * HEAD_DIM].astype(jnp.bfloat16)
        # scores: contraction on d (no explicit transpose materialized)
        s_h = jnp.einsum('qd,kd->qk', q_h, k_h,
                         preferred_element_type=jnp.float32) + bias_row
        s_h = s_h - jnp.max(s_h, axis=-1, keepdims=True)
        p_h = jnp.exp(s_h)
        p_h = p_h * pl.reciprocal(jnp.sum(p_h, axis=-1, keepdims=True), approx=True)
        ctx_parts.append(jnp.dot(p_h.astype(jnp.bfloat16), v_h,
                                 preferred_element_type=jnp.float32))  # (S, D)
    ctx = jnp.concatenate(ctx_parts, axis=-1)                          # (S, H) f32

    # ---- output projection + residual + LN ----
    attn_out = jnp.dot(ctx.astype(jnp.bfloat16), wo_ref[0],
                       preferred_element_type=jnp.float32) + bo_ref[0]
    x = _layernorm(x + attn_out, ln1_g_ref[0], ln1_b_ref[0])

    # ---- FFN + residual + LN ----
    h1 = _gelu(jnp.dot(x.astype(jnp.bfloat16), w1_ref[0],
                       preferred_element_type=jnp.float32) + b1_ref[0])
    h2 = jnp.dot(h1.astype(jnp.bfloat16), w2_ref[0],
                 preferred_element_type=jnp.float32) + b2_ref[0]
    x = _layernorm(x + h2, ln2_g_ref[0], ln2_b_ref[0])
    x_vmem[...] = x

    # ---- pooler(tanh on [CLS]) + dropout(identity) + Linear(H, 1), last layer only ----
    @pl.when(l == pl.num_programs(1) - 1)
    def _():
        cls = x[0:1, :]                                                # (1, H)
        o2 = jnp.tanh(jnp.dot(cls.astype(jnp.bfloat16), pool_w_ref[...],
                              preferred_element_type=jnp.float32) + pool_b_ref[...])
        # bo = Dropout(0.3)(o2) is the identity at inference time.
        logit = jnp.dot(o2.astype(jnp.bfloat16), out_w_ref[...],
                        preferred_element_type=jnp.float32) + out_b_ref[...]
        out_ref[0] = logit                                             # (1, 1)


# -------------------- parameters --------------------

def init_params(key):
    ks = iter(jax.random.split(key, 16))

    def nrm(shape, dtype=jnp.float32):
        return (0.02 * jax.random.normal(next(ks), shape, dtype=jnp.float32)).astype(dtype)

    wdt = jnp.bfloat16  # MXU matmul weights stored in bf16; f32 accumulation in-kernel
    return {
        "word_emb": nrm((VOCAB, HIDDEN)),
        "pos_emb": nrm((MAX_POS, HIDDEN)),
        "type_emb": nrm((TYPE_VOCAB, HIDDEN)),
        "emb_ln_g": jnp.ones((1, HIDDEN), jnp.float32),
        "emb_ln_b": jnp.zeros((1, HIDDEN), jnp.float32),
        # per-layer weights stacked along a leading LAYERS axis (indexed by grid axis 1)
        "wqkv": nrm((LAYERS, HIDDEN, 3 * HIDDEN), wdt),
        "bqkv": jnp.zeros((LAYERS, 1, 3 * HIDDEN), jnp.float32),
        "wo": nrm((LAYERS, HIDDEN, HIDDEN), wdt),
        "bo": jnp.zeros((LAYERS, 1, HIDDEN), jnp.float32),
        "ln1_g": jnp.ones((LAYERS, 1, HIDDEN), jnp.float32),
        "ln1_b": jnp.zeros((LAYERS, 1, HIDDEN), jnp.float32),
        "w1": nrm((LAYERS, HIDDEN, FFN), wdt),
        "b1": jnp.zeros((LAYERS, 1, FFN), jnp.float32),
        "w2": nrm((LAYERS, FFN, HIDDEN), wdt),
        "b2": jnp.zeros((LAYERS, 1, HIDDEN), jnp.float32),
        "ln2_g": jnp.ones((LAYERS, 1, HIDDEN), jnp.float32),
        "ln2_b": jnp.zeros((LAYERS, 1, HIDDEN), jnp.float32),
        "pooler_w": nrm((HIDDEN, HIDDEN), wdt),
        "pooler_b": jnp.zeros((1, HIDDEN), jnp.float32),
        "out_w": nrm((HIDDEN, 1), wdt),            # nn.Linear(LINEAR_INPUT, 1)
        "out_b": jnp.zeros((1, 1), jnp.float32),
    }


# -------------------- forward (BERT_CLASSIFIER.forward) --------------------

def bert_classifier_forward(params, ids, mask, token_type_ids):
    B, S = ids.shape

    # Embedding row gathers stay in XLA (tiny gathers are glue); everything else is one
    # fused Pallas call.
    we = jnp.take(params["word_emb"], ids, axis=0)                     # (B, S, H)
    pe = jnp.take(params["pos_emb"], jnp.arange(S), axis=0)[None]      # (1, S, H)
    te = jnp.take(params["type_emb"], token_type_ids, axis=0)          # (B, S, H)
    bias = ((1.0 - mask.astype(jnp.float32)) * (-1e9))[:, None, :]     # (B, 1, S)

    scale = 1.0 / math.sqrt(HEAD_DIM)

    per_batch = lambda b, l: (b, 0, 0)     # per-sequence activations
    per_layer = lambda b, l: (l, 0, 0)     # layer-stacked weights
    const2 = lambda b, l: (0, 0)
    const3 = lambda b, l: (0, 0, 0)

    in_specs = [
        pl.BlockSpec((1, S, HIDDEN), per_batch),            # we
        pl.BlockSpec((1, S, HIDDEN), const3),               # pe
        pl.BlockSpec((1, S, HIDDEN), per_batch),            # te
        pl.BlockSpec((1, 1, S), per_batch),                 # mask bias
        pl.BlockSpec((1, HIDDEN), const2),                  # emb_ln_g
        pl.BlockSpec((1, HIDDEN), const2),                  # emb_ln_b
        pl.BlockSpec((1, HIDDEN, 3 * HIDDEN), per_layer),   # wqkv
        pl.BlockSpec((1, 1, 3 * HIDDEN), per_layer),        # bqkv
        pl.BlockSpec((1, HIDDEN, HIDDEN), per_layer),       # wo
        pl.BlockSpec((1, 1, HIDDEN), per_layer),            # bo
        pl.BlockSpec((1, 1, HIDDEN), per_layer),            # ln1_g
        pl.BlockSpec((1, 1, HIDDEN), per_layer),            # ln1_b
        pl.BlockSpec((1, HIDDEN, FFN), per_layer),          # w1
        pl.BlockSpec((1, 1, FFN), per_layer),                # b1
        pl.BlockSpec((1, FFN, HIDDEN), per_layer),           # w2
        pl.BlockSpec((1, 1, HIDDEN), per_layer),             # b2
        pl.BlockSpec((1, 1, HIDDEN), per_layer),              # ln2_g
        pl.BlockSpec((1, 1, HIDDEN), per_layer),              # ln2_b
        pl.BlockSpec((HIDDEN, HIDDEN), const2),               # pooler_w
        pl.BlockSpec((1, HIDDEN), const2),                    # pooler_b
        pl.BlockSpec((HIDDEN, 1), const2),                    # out_w
        pl.BlockSpec((1, 1), const2),                         # out_b
    ]
    out_spec = pl.BlockSpec((1, 1, 1), per_batch)

    out = pl.pallas_call(
        functools.partial(encoder_kernel, scale=scale),
        out_shape=jax.ShapeDtypeStruct((B, 1, 1), jnp.float32),
        grid=(B, LAYERS),
        in_specs=in_specs,
        out_specs=out_spec,
        scratch_shapes=[pltpu.VMEM((S, HIDDEN), jnp.float32)],  # layer-resident activation
        compiler_params=pltpu.CompilerParams(
            dimension_semantics=("parallel", "arbitrary")),
    )(we, pe, te, bias,
      params["emb_ln_g"], params["emb_ln_b"],
      params["wqkv"], params["bqkv"], params["wo"], params["bo"],
      params["ln1_g"], params["ln1_b"],
      params["w1"], params["b1"], params["w2"], params["b2"],
      params["ln2_g"], params["ln2_b"],
      params["pooler_w"], params["pooler_b"],
      params["out_w"], params["out_b"])

    return out.reshape(B, 1)


if __name__ == "__main__":
    key = jax.random.PRNGKey(0)
    pkey, ikey = jax.random.split(key)
    params = init_params(pkey)

    ids = jax.random.randint(ikey, (BATCH, SEQ), 0, VOCAB, dtype=jnp.int32)
    mask = jnp.ones((BATCH, SEQ), dtype=jnp.int32).at[:, SEQ - 2:].set(0)
    token_type_ids = jnp.zeros((BATCH, SEQ), dtype=jnp.int32)

    out = jax.jit(bert_classifier_forward)(params, ids, mask, token_type_ids)
    jax.block_until_ready(out)
    assert out.shape == (BATCH, 1) and out.dtype == jnp.float32
    assert bool(jnp.all(jnp.isfinite(out)))
    print("KERNEL_OK")
</pallas_src>

<mosaic_0001>
module attributes {stable_mosaic.version = 11 : i64} {
  func.func @encoder_kernel(%arg0: i32, %arg1: i32, %arg2: memref<1x8x32xf32, #tpu.memory_space<vmem>>, %arg3: memref<1x8x32xf32, #tpu.memory_space<vmem>>, %arg4: memref<1x8x32xf32, #tpu.memory_space<vmem>>, %arg5: memref<1x1x8xf32, #tpu.memory_space<vmem>>, %arg6: memref<1x32xf32, #tpu.memory_space<vmem>>, %arg7: memref<1x32xf32, #tpu.memory_space<vmem>>, %arg8: memref<1x32x96xbf16, #tpu.memory_space<vmem>>, %arg9: memref<1x1x96xf32, #tpu.memory_space<vmem>>, %arg10: memref<1x32x32xbf16, #tpu.memory_space<vmem>>, %arg11: memref<1x1x32xf32, #tpu.memory_space<vmem>>, %arg12: memref<1x1x32xf32, #tpu.memory_space<vmem>>, %arg13: memref<1x1x32xf32, #tpu.memory_space<vmem>>, %arg14: memref<1x32x64xbf16, #tpu.memory_space<vmem>>, %arg15: memref<1x1x64xf32, #tpu.memory_space<vmem>>, %arg16: memref<1x64x32xbf16, #tpu.memory_space<vmem>>, %arg17: memref<1x1x32xf32, #tpu.memory_space<vmem>>, %arg18: memref<1x1x32xf32, #tpu.memory_space<vmem>>, %arg19: memref<1x1x32xf32, #tpu.memory_space<vmem>>, %arg20: memref<32x32xbf16, #tpu.memory_space<vmem>>, %arg21: memref<1x32xf32, #tpu.memory_space<vmem>>, %arg22: memref<32x1xbf16, #tpu.memory_space<vmem>>, %arg23: memref<1x1xf32, #tpu.memory_space<vmem>>, %arg24: memref<1x1x1xf32, #tpu.memory_space<vmem>>, %arg25: memref<8x32xf32, #tpu.memory_space<vmem>>) attributes {dimension_semantics = [#tpu.dimension_semantics<parallel>, #tpu.dimension_semantics<arbitrary>], iteration_bounds = array<i64: 2, 2>, scalar_prefetch = 0 : i64, scratch_operands = 1 : i64, tpu.core_type = #tpu.core_type<tc>, window_params = [{transform_indices = @transform_0, window_bounds = array<i64: 1, 8, 32>}, {pipeline_mode = #tpu.pipeline_mode<synchronous>, transform_indices = @transform_1, window_bounds = array<i64: 1, 8, 32>}, {transform_indices = @transform_2, window_bounds = array<i64: 1, 8, 32>}, {transform_indices = @transform_3, window_bounds = array<i64: 1, 1, 8>}, {pipeline_mode = #tpu.pipeline_mode<synchronous>, transform_indices = @transform_4, window_bounds = array<i64: 1, 32>}, {pipeline_mode = #tpu.pipeline_mode<synchronous>, transform_indices = @transform_5, window_bounds = array<i64: 1, 32>}, {transform_indices = @transform_6, window_bounds = array<i64: 1, 32, 96>}, {transform_indices = @transform_7, window_bounds = array<i64: 1, 1, 96>}, {transform_indices = @transform_8, window_bounds = array<i64: 1, 32, 32>}, {transform_indices = @transform_9, window_bounds = array<i64: 1, 1, 32>}, {transform_indices = @transform_10, window_bounds = array<i64: 1, 1, 32>}, {transform_indices = @transform_11, window_bounds = array<i64: 1, 1, 32>}, {transform_indices = @transform_12, window_bounds = array<i64: 1, 32, 64>}, {transform_indices = @transform_13, window_bounds = array<i64: 1, 1, 64>}, {transform_indices = @transform_14, window_bounds = array<i64: 1, 64, 32>}, {transform_indices = @transform_15, window_bounds = array<i64: 1, 1, 32>}, {transform_indices = @transform_16, window_bounds = array<i64: 1, 1, 32>}, {transform_indices = @transform_17, window_bounds = array<i64: 1, 1, 32>}, {pipeline_mode = #tpu.pipeline_mode<synchronous>, transform_indices = @transform_18, window_bounds = array<i64: 32, 32>}, {pipeline_mode = #tpu.pipeline_mode<synchronous>, transform_indices = @transform_19, window_bounds = array<i64: 1, 32>}, {pipeline_mode = #tpu.pipeline_mode<synchronous>, transform_indices = @transform_20, window_bounds = array<i64: 32, 1>}, {pipeline_mode = #tpu.pipeline_mode<synchronous>, transform_indices = @transform_21, window_bounds = array<i64: 1, 1>}, {transform_indices = @transform_22, window_bounds = array<i64: 1, 1, 1>}]} {
    %c0_i32 = arith.constant 0 : i32
    %0 = arith.cmpi eq, %arg1, %c0_i32 : i32
    %1 = arith.extui %0 : i1 to i32
    %c0_i32_0 = arith.constant 0 : i32
    %2 = arith.cmpi ne, %1, %c0_i32_0 : i32
    scf.if %2 {
      %c0_81 = arith.constant 0 : index
      %c0_82 = arith.constant 0 : index
      %c0_83 = arith.constant 0 : index
      %198 = vector.load %arg2[%c0_81, %c0_82, %c0_83] : memref<1x8x32xf32, #tpu.memory_space<vmem>>, vector<1x8x32xf32>
      %199 = vector.shape_cast %198 : vector<1x8x32xf32> to vector<8x32xf32>
      %c0_84 = arith.constant 0 : index
      %c0_85 = arith.constant 0 : index
      %c0_86 = arith.constant 0 : index
      %200 = vector.load %arg3[%c0_84, %c0_85, %c0_86] : memref<1x8x32xf32, #tpu.memory_space<vmem>>, vector<1x8x32xf32>
      %201 = vector.shape_cast %200 : vector<1x8x32xf32> to vector<8x32xf32>
      %202 = arith.addf %199, %201 : vector<8x32xf32>
      %c0_87 = arith.constant 0 : index
      %c0_88 = arith.constant 0 : index
      %c0_89 = arith.constant 0 : index
      %203 = vector.load %arg4[%c0_87, %c0_88, %c0_89] : memref<1x8x32xf32, #tpu.memory_space<vmem>>, vector<1x8x32xf32>
      %204 = vector.shape_cast %203 : vector<1x8x32xf32> to vector<8x32xf32>
      %205 = arith.addf %202, %204 : vector<8x32xf32>
      %c0_90 = arith.constant 0 : index
      %c0_91 = arith.constant 0 : index
      %206 = vector.load %arg6[%c0_90, %c0_91] : memref<1x32xf32, #tpu.memory_space<vmem>>, vector<1x32xf32>
      %c0_92 = arith.constant 0 : index
      %c0_93 = arith.constant 0 : index
      %207 = vector.load %arg7[%c0_92, %c0_93] : memref<1x32xf32, #tpu.memory_space<vmem>>, vector<1x32xf32>
      %cst_94 = arith.constant dense<0.000000e+00> : vector<8xf32>
      %208 = vector.multi_reduction <add>, %205, %cst_94 [1] : vector<8x32xf32> to vector<8xf32>
      %209 = vector.shape_cast %208 : vector<8xf32> to vector<8x1xf32>
      %cst_95 = arith.constant 3.200000e+01 : f32
      %210 = vector.broadcast %cst_95 : f32 to vector<8x1xf32>
      %211 = arith.divf %209, %210 : vector<8x1xf32>
      %212 = vector.broadcast %211 : vector<8x1xf32> to vector<8x32xf32>
      %213 = arith.subf %205, %212 : vector<8x32xf32>
      %214 = arith.mulf %213, %213 : vector<8x32xf32>
      %cst_96 = arith.constant dense<0.000000e+00> : vector<8xf32>
      %215 = vector.multi_reduction <add>, %214, %cst_96 [1] : vector<8x32xf32> to vector<8xf32>
      %216 = vector.shape_cast %215 : vector<8xf32> to vector<8x1xf32>
      %cst_97 = arith.constant 3.200000e+01 : f32
      %217 = vector.broadcast %cst_97 : f32 to vector<8x1xf32>
      %218 = arith.divf %216, %217 : vector<8x1xf32>
      %cst_98 = arith.constant 9.99999996E-13 : f32
      %219 = vector.broadcast %cst_98 : f32 to vector<8x1xf32>
      %220 = arith.addf %218, %219 : vector<8x1xf32>
      %221 = math.rsqrt %220 : vector<8x1xf32>
      %222 = vector.broadcast %221 : vector<8x1xf32> to vector<8x32xf32>
      %223 = arith.mulf %213, %222 : vector<8x32xf32>
      %224 = vector.broadcast %206 : vector<1x32xf32> to vector<8x32xf32>
      %225 = arith.mulf %223, %224 : vector<8x32xf32>
      %226 = vector.broadcast %207 : vector<1x32xf32> to vector<8x32xf32>
      %227 = arith.addf %225, %226 : vector<8x32xf32>
      %c0_99 = arith.constant 0 : index
      %c0_100 = arith.constant 0 : index
      %228 = vector.load %arg25[%c0_99, %c0_100] : memref<8x32xf32, #tpu.memory_space<vmem>>, vector<8x32xf32>
      tpu.vector_store %arg25[%c0_99, %c0_100], %227 {strides = array<i32>} : memref<8x32xf32, #tpu.memory_space<vmem>>, vector<8x32xf32>,
    } else {
    }
    %c0 = arith.constant 0 : index
    %c0_1 = arith.constant 0 : index
    %3 = vector.load %arg25[%c0, %c0_1] : memref<8x32xf32, #tpu.memory_space<vmem>>, vector<8x32xf32>
    %4 = arith.truncf %3 : vector<8x32xf32> to vector<8x32xbf16>
    %c0_2 = arith.constant 0 : index
    %c0_3 = arith.constant 0 : index
    %c0_4 = arith.constant 0 : index
    %5 = vector.load %arg8[%c0_2, %c0_3, %c0_4] : memref<1x32x96xbf16, #tpu.memory_space<vmem>>, vector<1x32x96xbf16>
    %6 = vector.shape_cast %5 : vector<1x32x96xbf16> to vector<32x96xbf16>
    %cst = arith.constant dense<0.000000e+00> : vector<8x96xf32>
    %7 = tpu.matmul %4, %6, %cst {dimension_numbers = #tpu.dot_dimension_numbers<[1], [0], [0], [1], [0, 0, 1, 1], [], []>} : vector<8x32xbf16>, vector<32x96xbf16>, vector<8x96xf32> -> vector<8x96xf32>
    %c0_5 = arith.constant 0 : index
    %c0_6 = arith.constant 0 : index
    %c0_7 = arith.constant 0 : index
    %8 = vector.load %arg9[%c0_5, %c0_6, %c0_7] : memref<1x1x96xf32, #tpu.memory_space<vmem>>, vector<1x1x96xf32>
    %9 = vector.shape_cast %8 : vector<1x1x96xf32> to vector<1x96xf32>
    %10 = vector.broadcast %9 : vector<1x96xf32> to vector<8x96xf32>
    %11 = arith.addf %7, %10 : vector<8x96xf32>
    %c0_8 = arith.constant 0 : index
    %c0_9 = arith.constant 0 : index
    %c0_10 = arith.constant 0 : index
    %12 = vector.load %arg5[%c0_8, %c0_9, %c0_10] : memref<1x1x8xf32, #tpu.memory_space<vmem>>, vector<1x1x8xf32>
    %13 = vector.shape_cast %12 : vector<1x1x8xf32> to vector<1x8xf32>
    %14 = vector.extract_strided_slice %11 {offsets = [0, 0], sizes = [8, 8], strides = [1, 1]} : vector<8x96xf32> to vector<8x8xf32>
    %cst_11 = arith.constant 0.353553385 : f32
    %15 = vector.broadcast %cst_11 : f32 to vector<8x8xf32>
    %16 = arith.mulf %14, %15 : vector<8x8xf32>
    %17 = arith.truncf %16 : vector<8x8xf32> to vector<8x8xbf16>
    %18 = vector.extract_strided_slice %11 {offsets = [0, 32], sizes = [8, 8], strides = [1, 1]} : vector<8x96xf32> to vector<8x8xf32>
    %19 = arith.truncf %18 : vector<8x8xf32> to vector<8x8xbf16>
    %20 = vector.extract_strided_slice %11 {offsets = [0, 64], sizes = [8, 8], strides = [1, 1]} : vector<8x96xf32> to vector<8x8xf32>
    %21 = arith.truncf %20 : vector<8x8xf32> to vector<8x8xbf16>
    "tpu.trace_start"() <{level = 10 : i32, message = "qd,kd->qk"}> : () -> ()
    %cst_12 = arith.constant dense<0.000000e+00> : vector<8x8xf32>
    %22 = tpu.matmul %17, %19, %cst_12 {dimension_numbers = #tpu.dot_dimension_numbers<[1], [1], [0], [0], [0, 0, 1, 0], [], []>} : vector<8x8xbf16>, vector<8x8xbf16>, vector<8x8xf32> -> vector<8x8xf32>
    "tpu.trace_stop"() : () -> ()
    %23 = vector.broadcast %13 : vector<1x8xf32> to vector<8x8xf32>
    %24 = arith.addf %22, %23 : vector<8x8xf32>
    %cst_13 = arith.constant dense<0xFF800000> : vector<8xf32>
    %25 = vector.multi_reduction <maximumf>, %24, %cst_13 [1] : vector<8x8xf32> to vector<8xf32>
    %26 = vector.shape_cast %25 : vector<8xf32> to vector<8x1xf32>
    %27 = vector.broadcast %26 : vector<8x1xf32> to vector<8x8xf32>
    %28 = arith.subf %24, %27 : vector<8x8xf32>
    %29 = math.exp %28 : vector<8x8xf32>
    %cst_14 = arith.constant dense<0.000000e+00> : vector<8xf32>
    %30 = vector.multi_reduction <add>, %29, %cst_14 [1] : vector<8x8xf32> to vector<8xf32>
    %31 = vector.shape_cast %30 : vector<8xf32> to vector<8x1xf32>
    %32 = tpu.reciprocal %31 {approx = true} : vector<8x1xf32> -> vector<8x1xf32>
    %33 = vector.broadcast %32 : vector<8x1xf32> to vector<8x8xf32>
    %34 = arith.mulf %29, %33 : vector<8x8xf32>
    %35 = arith.truncf %34 : vector<8x8xf32> to vector<8x8xbf16>
    %cst_15 = arith.constant dense<0.000000e+00> : vector<8x8xf32>
    %36 = tpu.matmul %35, %21, %cst_15 {dimension_numbers = #tpu.dot_dimension_numbers<[1], [0], [0], [1], [0, 0, 1, 1], [], []>} : vector<8x8xbf16>, vector<8x8xbf16>, vector<8x8xf32> -> vector<8x8xf32>
    %37 = vector.extract_strided_slice %11 {offsets = [0, 8], sizes = [8, 8], strides = [1, 1]} : vector<8x96xf32> to vector<8x8xf32>
    %cst_16 = arith.constant 0.353553385 : f32
    %38 = vector.broadcast %cst_16 : f32 to vector<8x8xf32>
    %39 = arith.mulf %37, %38 : vector<8x8xf32>
    %40 = arith.truncf %39 : vector<8x8xf32> to vector<8x8xbf16>
    %41 = vector.extract_strided_slice %11 {offsets = [0, 40], sizes = [8, 8], strides = [1, 1]} : vector<8x96xf32> to vector<8x8xf32>
    %42 = arith.truncf %41 : vector<8x8xf32> to vector<8x8xbf16>
    %43 = vector.extract_strided_slice %11 {offsets = [0, 72], sizes = [8, 8], strides = [1, 1]} : vector<8x96xf32> to vector<8x8xf32>
    %44 = arith.truncf %43 : vector<8x8xf32> to vector<8x8xbf16>
    "tpu.trace_start"() <{level = 10 : i32, message = "qd,kd->qk"}> : () -> ()
    %cst_17 = arith.constant dense<0.000000e+00> : vector<8x8xf32>
    %45 = tpu.matmul %40, %42, %cst_17 {dimension_numbers = #tpu.dot_dimension_numbers<[1], [1], [0], [0], [0, 0, 1, 0], [], []>} : vector<8x8xbf16>, vector<8x8xbf16>, vector<8x8xf32> -> vector<8x8xf32>
    "tpu.trace_stop"() : () -> ()
    %46 = vector.broadcast %13 : vector<1x8xf32> to vector<8x8xf32>
    %47 = arith.addf %45, %46 : vector<8x8xf32>
    %cst_18 = arith.constant dense<0xFF800000> : vector<8xf32>
    %48 = vector.multi_reduction <maximumf>, %47, %cst_18 [1] : vector<8x8xf32> to vector<8xf32>
    %49 = vector.shape_cast %48 : vector<8xf32> to vector<8x1xf32>
    %50 = vector.broadcast %49 : vector<8x1xf32> to vector<8x8xf32>
    %51 = arith.subf %47, %50 : vector<8x8xf32>
    %52 = math.exp %51 : vector<8x8xf32>
    %cst_19 = arith.constant dense<0.000000e+00> : vector<8xf32>
    %53 = vector.multi_reduction <add>, %52, %cst_19 [1] : vector<8x8xf32> to vector<8xf32>
    %54 = vector.shape_cast %53 : vector<8xf32> to vector<8x1xf32>
    %55 = tpu.reciprocal %54 {approx = true} : vector<8x1xf32> -> vector<8x1xf32>
    %56 = vector.broadcast %55 : vector<8x1xf32> to vector<8x8xf32>
    %57 = arith.mulf %52, %56 : vector<8x8xf32>
    %58 = arith.truncf %57 : vector<8x8xf32> to vector<8x8xbf16>
    %cst_20 = arith.constant dense<0.000000e+00> : vector<8x8xf32>
    %59 = tpu.matmul %58, %44, %cst_20 {dimension_numbers = #tpu.dot_dimension_numbers<[1], [0], [0], [1], [0, 0, 1, 1], [], []>} : vector<8x8xbf16>, vector<8x8xbf16>, vector<8x8xf32> -> vector<8x8xf32>
    %60 = vector.extract_strided_slice %11 {offsets = [0, 16], sizes = [8, 8], strides = [1, 1]} : vector<8x96xf32> to vector<8x8xf32>
    %cst_21 = arith.constant 0.353553385 : f32
    %61 = vector.broadcast %cst_21 : f32 to vector<8x8xf32>
    %62 = arith.mulf %60, %61 : vector<8x8xf32>
    %63 = arith.truncf %62 : vector<8x8xf32> to vector<8x8xbf16>
    %64 = vector.extract_strided_slice %11 {offsets = [0, 48], sizes = [8, 8], strides = [1, 1]} : vector<8x96xf32> to vector<8x8xf32>
    %65 = arith.truncf %64 : vector<8x8xf32> to vector<8x8xbf16>
    %66 = vector.extract_strided_slice %11 {offsets = [0, 80], sizes = [8, 8], strides = [1, 1]} : vector<8x96xf32> to vector<8x8xf32>
    %67 = arith.truncf %66 : vector<8x8xf32> to vector<8x8xbf16>
    "tpu.trace_start"() <{level = 10 : i32, message = "qd,kd->qk"}> : () -> ()
    %cst_22 = arith.constant dense<0.000000e+00> : vector<8x8xf32>
    %68 = tpu.matmul %63, %65, %cst_22 {dimension_numbers = #tpu.dot_dimension_numbers<[1], [1], [0], [0], [0, 0, 1, 0], [], []>} : vector<8x8xbf16>, vector<8x8xbf16>, vector<8x8xf32> -> vector<8x8xf32>
    "tpu.trace_stop"() : () -> ()
    %69 = vector.broadcast %13 : vector<1x8xf32> to vector<8x8xf32>
    %70 = arith.addf %68, %69 : vector<8x8xf32>
    %cst_23 = arith.constant dense<0xFF800000> : vector<8xf32>
    %71 = vector.multi_reduction <maximumf>, %70, %cst_23 [1] : vector<8x8xf32> to vector<8xf32>
    %72 = vector.shape_cast %71 : vector<8xf32> to vector<8x1xf32>
    %73 = vector.broadcast %72 : vector<8x1xf32> to vector<8x8xf32>
    %74 = arith.subf %70, %73 : vector<8x8xf32>
    %75 = math.exp %74 : vector<8x8xf32>
    %cst_24 = arith.constant dense<0.000000e+00> : vector<8xf32>
    %76 = vector.multi_reduction <add>, %75, %cst_24 [1] : vector<8x8xf32> to vector<8xf32>
    %77 = vector.shape_cast %76 : vector<8xf32> to vector<8x1xf32>
    %78 = tpu.reciprocal %77 {approx = true} : vector<8x1xf32> -> vector<8x1xf32>
    %79 = vector.broadcast %78 : vector<8x1xf32> to vector<8x8xf32>
    %80 = arith.mulf %75, %79 : vector<8x8xf32>
    %81 = arith.truncf %80 : vector<8x8xf32> to vector<8x8xbf16>
    %cst_25 = arith.constant dense<0.000000e+00> : vector<8x8xf32>
    %82 = tpu.matmul %81, %67, %cst_25 {dimension_numbers = #tpu.dot_dimension_numbers<[1], [0], [0], [1], [0, 0, 1, 1], [], []>} : vector<8x8xbf16>, vector<8x8xbf16>, vector<8x8xf32> -> vector<8x8xf32>
    %83 = vector.extract_strided_slice %11 {offsets = [0, 24], sizes = [8, 8], strides = [1, 1]} : vector<8x96xf32> to vector<8x8xf32>
    %cst_26 = arith.constant 0.353553385 : f32
    %84 = vector.broadcast %cst_26 : f32 to vector<8x8xf32>
    %85 = arith.mulf %83, %84 : vector<8x8xf32>
    %86 = arith.truncf %85 : vector<8x8xf32> to vector<8x8xbf16>
    %87 = vector.extract_strided_slice %11 {offsets = [0, 56], sizes = [8, 8], strides = [1, 1]} : vector<8x96xf32> to vector<8x8xf32>
    %88 = arith.truncf %87 : vector<8x8xf32> to vector<8x8xbf16>
    %89 = vector.extract_strided_slice %11 {offsets = [0, 88], sizes = [8, 8], strides = [1, 1]} : vector<8x96xf32> to vector<8x8xf32>
    %90 = arith.truncf %89 : vector<8x8xf32> to vector<8x8xbf16>
    "tpu.trace_start"() <{level = 10 : i32, message = "qd,kd->qk"}> : () -> ()
    %cst_27 = arith.constant dense<0.000000e+00> : vector<8x8xf32>
    %91 = tpu.matmul %86, %88, %cst_27 {dimension_numbers = #tpu.dot_dimension_numbers<[1], [1], [0], [0], [0, 0, 1, 0], [], []>} : vector<8x8xbf16>, vector<8x8xbf16>, vector<8x8xf32> -> vector<8x8xf32>
    "tpu.trace_stop"() : () -> ()
    %92 = vector.broadcast %13 : vector<1x8xf32> to vector<8x8xf32>
    %93 = arith.addf %91, %92 : vector<8x8xf32>
    %cst_28 = arith.constant dense<0xFF800000> : vector<8xf32>
    %94 = vector.multi_reduction <maximumf>, %93, %cst_28 [1] : vector<8x8xf32> to vector<8xf32>
    %95 = vector.shape_cast %94 : vector<8xf32> to vector<8x1xf32>
    %96 = vector.broadcast %95 : vector<8x1xf32> to vector<8x8xf32>
    %97 = arith.subf %93, %96 : vector<8x8xf32>
    %98 = math.exp %97 : vector<8x8xf32>
    %cst_29 = arith.constant dense<0.000000e+00> : vector<8xf32>
    %99 = vector.multi_reduction <add>, %98, %cst_29 [1] : vector<8x8xf32> to vector<8xf32>
    %100 = vector.shape_cast %99 : vector<8xf32> to vector<8x1xf32>
    %101 = tpu.reciprocal %100 {approx = true} : vector<8x1xf32> -> vector<8x1xf32>
    %102 = vector.broadcast %101 : vector<8x1xf32> to vector<8x8xf32>
    %103 = arith.mulf %98, %102 : vector<8x8xf32>
    %104 = arith.truncf %103 : vector<8x8xf32> to vector<8x8xbf16>
    %cst_30 = arith.constant dense<0.000000e+00> : vector<8x8xf32>
    %105 = tpu.matmul %104, %90, %cst_30 {dimension_numbers = #tpu.dot_dimension_numbers<[1], [0], [0], [1], [0, 0, 1, 1], [], []>} : vector<8x8xbf16>, vector<8x8xbf16>, vector<8x8xf32> -> vector<8x8xf32>
    %106 = tpu.concatenate %36, %59, %82, %105 in 1 : vector<8x8xf32>, vector<8x8xf32>, vector<8x8xf32>, vector<8x8xf32> -> vector<8x32xf32>
    %107 = arith.truncf %106 : vector<8x32xf32> to vector<8x32xbf16>
    %c0_31 = arith.constant 0 : index
    %c0_32 = arith.constant 0 : index
    %c0_33 = arith.constant 0 : index
    %108 = vector.load %arg10[%c0_31, %c0_32, %c0_33] : memref<1x32x32xbf16, #tpu.memory_space<vmem>>, vector<1x32x32xbf16>
    %109 = vector.shape_cast %108 : vector<1x32x32xbf16> to vector<32x32xbf16>
    %cst_34 = arith.constant dense<0.000000e+00> : vector<8x32xf32>
    %110 = tpu.matmul %107, %109, %cst_34 {dimension_numbers = #tpu.dot_dimension_numbers<[1], [0], [0], [1], [0, 0, 1, 1], [], []>} : vector<8x32xbf16>, vector<32x32xbf16>, vector<8x32xf32> -> vector<8x32xf32>
    %c0_35 = arith.constant 0 : index
    %c0_36 = arith.constant 0 : index
    %c0_37 = arith.constant 0 : index
    %111 = vector.load %arg11[%c0_35, %c0_36, %c0_37] : memref<1x1x32xf32, #tpu.memory_space<vmem>>, vector<1x1x32xf32>
    %112 = vector.shape_cast %111 : vector<1x1x32xf32> to vector<1x32xf32>
    %113 = vector.broadcast %112 : vector<1x32xf32> to vector<8x32xf32>
    %114 = arith.addf %110, %113 : vector<8x32xf32>
    %115 = arith.addf %3, %114 : vector<8x32xf32>
    %c0_38 = arith.constant 0 : index
    %c0_39 = arith.constant 0 : index
    %c0_40 = arith.constant 0 : index
    %116 = vector.load %arg12[%c0_38, %c0_39, %c0_40] : memref<1x1x32xf32, #tpu.memory_space<vmem>>, vector<1x1x32xf32>
    %117 = vector.shape_cast %116 : vector<1x1x32xf32> to vector<1x32xf32>
    %c0_41 = arith.constant 0 : index
    %c0_42 = arith.constant 0 : index
    %c0_43 = arith.constant 0 : index
    %118 = vector.load %arg13[%c0_41, %c0_42, %c0_43] : memref<1x1x32xf32, #tpu.memory_space<vmem>>, vector<1x1x32xf32>
    %119 = vector.shape_cast %118 : vector<1x1x32xf32> to vector<1x32xf32>
    %cst_44 = arith.constant dense<0.000000e+00> : vector<8xf32>
    %120 = vector.multi_reduction <add>, %115, %cst_44 [1] : vector<8x32xf32> to vector<8xf32>
    %121 = vector.shape_cast %120 : vector<8xf32> to vector<8x1xf32>
    %cst_45 = arith.constant 3.200000e+01 : f32
    %122 = vector.broadcast %cst_45 : f32 to vector<8x1xf32>
    %123 = arith.divf %121, %122 : vector<8x1xf32>
    %124 = vector.broadcast %123 : vector<8x1xf32> to vector<8x32xf32>
    %125 = arith.subf %115, %124 : vector<8x32xf32>
    %126 = arith.mulf %125, %125 : vector<8x32xf32>
    %cst_46 = arith.constant dense<0.000000e+00> : vector<8xf32>
    %127 = vector.multi_reduction <add>, %126, %cst_46 [1] : vector<8x32xf32> to vector<8xf32>
    %128 = vector.shape_cast %127 : vector<8xf32> to vector<8x1xf32>
    %cst_47 = arith.constant 3.200000e+01 : f32
    %129 = vector.broadcast %cst_47 : f32 to vector<8x1xf32>
    %130 = arith.divf %128, %129 : vector<8x1xf32>
    %cst_48 = arith.constant 9.99999996E-13 : f32
    %131 = vector.broadcast %cst_48 : f32 to vector<8x1xf32>
    %132 = arith.addf %130, %131 : vector<8x1xf32>
    %133 = math.rsqrt %132 : vector<8x1xf32>
    %134 = vector.broadcast %133 : vector<8x1xf32> to vector<8x32xf32>
    %135 = arith.mulf %125, %134 : vector<8x32xf32>
    %136 = vector.broadcast %117 : vector<1x32xf32> to vector<8x32xf32>
    %137 = arith.mulf %135, %136 : vector<8x32xf32>
    %138 = vector.broadcast %119 : vector<1x32xf32> to vector<8x32xf32>
    %139 = arith.addf %137, %138 : vector<8x32xf32>
    %140 = arith.truncf %139 : vector<8x32xf32> to vector<8x32xbf16>
    %c0_49 = arith.constant 0 : index
    %c0_50 = arith.constant 0 : index
    %c0_51 = arith.constant 0 : index
    %141 = vector.load %arg14[%c0_49, %c0_50, %c0_51] : memref<1x32x64xbf16, #tpu.memory_space<vmem>>, vector<1x32x64xbf16>
    %142 = vector.shape_cast %141 : vector<1x32x64xbf16> to vector<32x64xbf16>
    %cst_52 = arith.constant dense<0.000000e+00> : vector<8x64xf32>
    %143 = tpu.matmul %140, %142, %cst_52 {dimension_numbers = #tpu.dot_dimension_numbers<[1], [0], [0], [1], [0, 0, 1, 1], [], []>} : vector<8x32xbf16>, vector<32x64xbf16>, vector<8x64xf32> -> vector<8x64xf32>
    %c0_53 = arith.constant 0 : index
    %c0_54 = arith.constant 0 : index
    %c0_55 = arith.constant 0 : index
    %144 = vector.load %arg15[%c0_53, %c0_54, %c0_55] : memref<1x1x64xf32, #tpu.memory_space<vmem>>, vector<1x1x64xf32>
    %145 = vector.shape_cast %144 : vector<1x1x64xf32> to vector<1x64xf32>
    %146 = vector.broadcast %145 : vector<1x64xf32> to vector<8x64xf32>
    %147 = arith.addf %143, %146 : vector<8x64xf32>
    %cst_56 = arith.constant 5.000000e-01 : f32
    %148 = vector.broadcast %cst_56 : f32 to vector<8x64xf32>
    %149 = arith.mulf %148, %147 : vector<8x64xf32>
    %cst_57 = arith.constant 4.471500e-02 : f32
    %150 = vector.broadcast %cst_57 : f32 to vector<8x64xf32>
    %151 = arith.mulf %150, %147 : vector<8x64xf32>
    %152 = arith.mulf %151, %147 : vector<8x64xf32>
    %153 = arith.mulf %152, %147 : vector<8x64xf32>
    %154 = arith.addf %147, %153 : vector<8x64xf32>
    %cst_58 = arith.constant 0.797884583 : f32
    %155 = vector.broadcast %cst_58 : f32 to vector<8x64xf32>
    %156 = arith.mulf %155, %154 : vector<8x64xf32>
    %157 = math.tanh %156 : vector<8x64xf32>
    %cst_59 = arith.constant 1.000000e+00 : f32
    %158 = vector.broadcast %cst_59 : f32 to vector<8x64xf32>
    %159 = arith.addf %158, %157 : vector<8x64xf32>
    %160 = arith.mulf %149, %159 : vector<8x64xf32>
    %161 = arith.truncf %160 : vector<8x64xf32> to vector<8x64xbf16>
    %c0_60 = arith.constant 0 : index
    %c0_61 = arith.constant 0 : index
    %c0_62 = arith.constant 0 : index
    %162 = vector.load %arg16[%c0_60, %c0_61, %c0_62] : memref<1x64x32xbf16, #tpu.memory_space<vmem>>, vector<1x64x32xbf16>
    %163 = vector.shape_cast %162 : vector<1x64x32xbf16> to vector<64x32xbf16>
    %cst_63 = arith.constant dense<0.000000e+00> : vector<8x32xf32>
    %164 = tpu.matmul %161, %163, %cst_63 {dimension_numbers = #tpu.dot_dimension_numbers<[1], [0], [0], [1], [0, 0, 1, 1], [], []>} : vector<8x64xbf16>, vector<64x32xbf16>, vector<8x32xf32> -> vector<8x32xf32>
    %c0_64 = arith.constant 0 : index
    %c0_65 = arith.constant 0 : index
    %c0_66 = arith.constant 0 : index
    %165 = vector.load %arg17[%c0_64, %c0_65, %c0_66] : memref<1x1x32xf32, #tpu.memory_space<vmem>>, vector<1x1x32xf32>
    %166 = vector.shape_cast %165 : vector<1x1x32xf32> to vector<1x32xf32>
    %167 = vector.broadcast %166 : vector<1x32xf32> to vector<8x32xf32>
    %168 = arith.addf %164, %167 : vector<8x32xf32>
    %169 = arith.addf %139, %168 : vector<8x32xf32>
    %c0_67 = arith.constant 0 : index
    %c0_68 = arith.constant 0 : index
    %c0_69 = arith.constant 0 : index
    %170 = vector.load %arg18[%c0_67, %c0_68, %c0_69] : memref<1x1x32xf32, #tpu.memory_space<vmem>>, vector<1x1x32xf32>
    %171 = vector.shape_cast %170 : vector<1x1x32xf32> to vector<1x32xf32>
    %c0_70 = arith.constant 0 : index
    %c0_71 = arith.constant 0 : index
    %c0_72 = arith.constant 0 : index
    %172 = vector.load %arg19[%c0_70, %c0_71, %c0_72] : memref<1x1x32xf32, #tpu.memory_space<vmem>>, vector<1x1x32xf32>
    %173 = vector.shape_cast %172 : vector<1x1x32xf32> to vector<1x32xf32>
    %cst_73 = arith.constant dense<0.000000e+00> : vector<8xf32>
    %174 = vector.multi_reduction <add>, %169, %cst_73 [1] : vector<8x32xf32> to vector<8xf32>
    %175 = vector.shape_cast %174 : vector<8xf32> to vector<8x1xf32>
    %cst_74 = arith.constant 3.200000e+01 : f32
    %176 = vector.broadcast %cst_74 : f32 to vector<8x1xf32>
    %177 = arith.divf %175, %176 : vector<8x1xf32>
    %178 = vector.broadcast %177 : vector<8x1xf32> to vector<8x32xf32>
    %179 = arith.subf %169, %178 : vector<8x32xf32>
    %180 = arith.mulf %179, %179 : vector<8x32xf32>
    %cst_75 = arith.constant dense<0.000000e+00> : vector<8xf32>
    %181 = vector.multi_reduction <add>, %180, %cst_75 [1] : vector<8x32xf32> to vector<8xf32>
    %182 = vector.shape_cast %181 : vector<8xf32> to vector<8x1xf32>
    %cst_76 = arith.constant 3.200000e+01 : f32
    %183 = vector.broadcast %cst_76 : f32 to vector<8x1xf32>
    %184 = arith.divf %182, %183 : vector<8x1xf32>
    %cst_77 = arith.constant 9.99999996E-13 : f32
    %185 = vector.broadcast %cst_77 : f32 to vector<8x1xf32>
    %186 = arith.addf %184, %185 : vector<8x1xf32>
    %187 = math.rsqrt %186 : vector<8x1xf32>
    %188 = vector.broadcast %187 : vector<8x1xf32> to vector<8x32xf32>
    %189 = arith.mulf %179, %188 : vector<8x32xf32>
    %190 = vector.broadcast %171 : vector<1x32xf32> to vector<8x32xf32>
    %191 = arith.mulf %189, %190 : vector<8x32xf32>
    %192 = vector.broadcast %173 : vector<1x32xf32> to vector<8x32xf32>
    %193 = arith.addf %191, %192 : vector<8x32xf32>
    %c0_78 = arith.constant 0 : index
    %c0_79 = arith.constant 0 : index
    %194 = vector.load %arg25[%c0_78, %c0_79] : memref<8x32xf32, #tpu.memory_space<vmem>>, vector<8x32xf32>
    tpu.vector_store %arg25[%c0_78, %c0_79], %193 {strides = array<i32>} : memref<8x32xf32, #tpu.memory_space<vmem>>, vector<8x32xf32>,
    %c1_i32 = arith.constant 1 : i32
    %195 = arith.cmpi eq, %arg1, %c1_i32 : i32
    %196 = arith.extui %195 : i1 to i32
    %c0_i32_80 = arith.constant 0 : i32
    %197 = arith.cmpi ne, %196, %c0_i32_80 : i32
    scf.if %197 {
      %198 = vector.extract_strided_slice %193 {offsets = [0, 0], sizes = [1, 32], strides = [1, 1]} : vector<8x32xf32> to vector<1x32xf32>
      %199 = arith.truncf %198 : vector<1x32xf32> to vector<1x32xbf16>
      %c0_81 = arith.constant 0 : index
      %c0_82 = arith.constant 0 : index
      %200 = vector.load %arg20[%c0_81, %c0_82] : memref<32x32xbf16, #tpu.memory_space<vmem>>, vector<32x32xbf16>
      %cst_83 = arith.constant dense<0.000000e+00> : vector<1x32xf32>
      %201 = tpu.matmul %199, %200, %cst_83 {dimension_numbers = #tpu.dot_dimension_numbers<[1], [0], [0], [1], [0, 0, 1, 1], [], []>} : vector<1x32xbf16>, vector<32x32xbf16>, vector<1x32xf32> -> vector<1x32xf32>
      %c0_84 = arith.constant 0 : index
      %c0_85 = arith.constant 0 : index
      %202 = vector.load %arg21[%c0_84, %c0_85] : memref<1x32xf32, #tpu.memory_space<vmem>>, vector<1x32xf32>
      %203 = arith.addf %201, %202 : vector<1x32xf32>
      %204 = math.tanh %203 : vector<1x32xf32>
      %205 = arith.truncf %204 : vector<1x32xf32> to vector<1x32xbf16>
      %c0_86 = arith.constant 0 : index
      %c0_87 = arith.constant 0 : index
      %206 = vector.load %arg22[%c0_86, %c0_87] : memref<32x1xbf16, #tpu.memory_space<vmem>>, vector<32x1xbf16>
      %cst_88 = arith.constant dense<0.000000e+00> : vector<1x1xf32>
      %207 = tpu.matmul %205, %206, %cst_88 {dimension_numbers = #tpu.dot_dimension_numbers<[1], [0], [0], [1], [0, 0, 1, 1], [], []>} : vector<1x32xbf16>, vector<32x1xbf16>, vector<1x1xf32> -> vector<1x1xf32>
      %c0_89 = arith.constant 0 : index
      %c0_90 = arith.constant 0 : index
      %208 = vector.load %arg23[%c0_89, %c0_90] : memref<1x1xf32, #tpu.memory_space<vmem>>, vector<1x1xf32>
      %209 = arith.addf %207, %208 : vector<1x1xf32>
      %c0_91 = arith.constant 0 : index
      %c0_92 = arith.constant 0 : index
      %c0_93 = arith.constant 0 : index
      %210 = vector.load %arg24[%c0_91, %c0_92, %c0_93] : memref<1x1x1xf32, #tpu.memory_space<vmem>>, vector<1x1x1xf32>
      %211 = vector.shape_cast %210 : vector<1x1x1xf32> to vector<1x1xf32>
      %212 = vector.shape_cast %209 : vector<1x1xf32> to vector<1x1x1xf32>
      tpu.vector_store %arg24[%c0_91, %c0_92, %c0_93], %212 {strides = array<i32>} : memref<1x1x1xf32, #tpu.memory_space<vmem>>, vector<1x1x1xf32>,
    } else {
    }
    return
  }
  func.func @transform_0(%arg0: i32, %arg1: i32) -> (i32, i32, i32) {
    %c0_i32 = arith.constant 0 : i32
    %c0_i32_0 = arith.constant 0 : i32
    %c0_i32_1 = arith.constant 0 : i32
    return %arg0, %c0_i32, %c0_i32_0 : i32, i32, i32
  }
  func.func @transform_1(%arg0: i32, %arg1: i32) -> (i32, i32, i32) {
    %c0_i32 = arith.constant 0 : i32
    %c0_i32_0 = arith.constant 0 : i32
    %c0_i32_1 = arith.constant 0 : i32
    %c0_i32_2 = arith.constant 0 : i32
    return %c0_i32, %c0_i32_0, %c0_i32_1 : i32, i32, i32
  }
  func.func @transform_2(%arg0: i32, %arg1: i32) -> (i32, i32, i32) {
    %c0_i32 = arith.constant 0 : i32
    %c0_i32_0 = arith.constant 0 : i32
    %c0_i32_1 = arith.constant 0 : i32
    return %arg0, %c0_i32, %c0_i32_0 : i32, i32, i32
  }
  func.func @transform_3(%arg0: i32, %arg1: i32) -> (i32, i32, i32) {
    %c0_i32 = arith.constant 0 : i32
    %c0_i32_0 = arith.constant 0 : i32
    %c0_i32_1 = arith.constant 0 : i32
    return %arg0, %c0_i32, %c0_i32_0 : i32, i32, i32
  }
  func.func @transform_4(%arg0: i32, %arg1: i32) -> (i32, i32) {
    %c0_i32 = arith.constant 0 : i32
    %c0_i32_0 = arith.constant 0 : i32
    %c0_i32_1 = arith.constant 0 : i32
    return %c0_i32, %c0_i32_0 : i32, i32
  }
  func.func @transform_5(%arg0: i32, %arg1: i32) -> (i32, i32) {
    %c0_i32 = arith.constant 0 : i32
    %c0_i32_0 = arith.constant 0 : i32
    %c0_i32_1 = arith.constant 0 : i32
    return %c0_i32, %c0_i32_0 : i32, i32
  }
  func.func @transform_6(%arg0: i32, %arg1: i32) -> (i32, i32, i32) {
    %c0_i32 = arith.constant 0 : i32
    %c0_i32_0 = arith.constant 0 : i32
    %c0_i32_1 = arith.constant 0 : i32
    return %arg1, %c0_i32, %c0_i32_0 : i32, i32, i32
  }
  func.func @transform_7(%arg0: i32, %arg1: i32) -> (i32, i32, i32) {
    %c0_i32 = arith.constant 0 : i32
    %c0_i32_0 = arith.constant 0 : i32
    %c0_i32_1 = arith.constant 0 : i32
    return %arg1, %c0_i32, %c0_i32_0 : i32, i32, i32
  }
  func.func @transform_8(%arg0: i32, %arg1: i32) -> (i32, i32, i32) {
    %c0_i32 = arith.constant 0 : i32
    %c0_i32_0 = arith.constant 0 : i32
    %c0_i32_1 = arith.constant 0 : i32
    return %arg1, %c0_i32, %c0_i32_0 : i32, i32, i32
  }
  func.func @transform_9(%arg0: i32, %arg1: i32) -> (i32, i32, i32) {
    %c0_i32 = arith.constant 0 : i32
    %c0_i32_0 = arith.constant 0 : i32
    %c0_i32_1 = arith.constant 0 : i32
    return %arg1, %c0_i32, %c0_i32_0 : i32, i32, i32
  }
  func.func @transform_10(%arg0: i32, %arg1: i32) -> (i32, i32, i32) {
    %c0_i32 = arith.constant 0 : i32
    %c0_i32_0 = arith.constant 0 : i32
    %c0_i32_1 = arith.constant 0 : i32
    return %arg1, %c0_i32, %c0_i32_0 : i32, i32, i32
  }
  func.func @transform_11(%arg0: i32, %arg1: i32) -> (i32, i32, i32) {
    %c0_i32 = arith.constant 0 : i32
    %c0_i32_0 = arith.constant 0 : i32
    %c0_i32_1 = arith.constant 0 : i32
    return %arg1, %c0_i32, %c0_i32_0 : i32, i32, i32
  }
  func.func @transform_12(%arg0: i32, %arg1: i32) -> (i32, i32, i32) {
    %c0_i32 = arith.constant 0 : i32
    %c0_i32_0 = arith.constant 0 : i32
    %c0_i32_1 = arith.constant 0 : i32
    return %arg1, %c0_i32, %c0_i32_0 : i32, i32, i32
  }
  func.func @transform_13(%arg0: i32, %arg1: i32) -> (i32, i32, i32) {
    %c0_i32 = arith.constant 0 : i32
    %c0_i32_0 = arith.constant 0 : i32
    %c0_i32_1 = arith.constant 0 : i32
    return %arg1, %c0_i32, %c0_i32_0 : i32, i32, i32
  }
  func.func @transform_14(%arg0: i32, %arg1: i32) -> (i32, i32, i32) {
    %c0_i32 = arith.constant 0 : i32
    %c0_i32_0 = arith.constant 0 : i32
    %c0_i32_1 = arith.constant 0 : i32
    return %arg1, %c0_i32, %c0_i32_0 : i32, i32, i32
  }
  func.func @transform_15(%arg0: i32, %arg1: i32) -> (i32, i32, i32) {
    %c0_i32 = arith.constant 0 : i32
    %c0_i32_0 = arith.constant 0 : i32
    %c0_i32_1 = arith.constant 0 : i32
    return %arg1, %c0_i32, %c0_i32_0 : i32, i32, i32
  }
  func.func @transform_16(%arg0: i32, %arg1: i32) -> (i32, i32, i32) {
    %c0_i32 = arith.constant 0 : i32
    %c0_i32_0 = arith.constant 0 : i32
    %c0_i32_1 = arith.constant 0 : i32
    return %arg1, %c0_i32, %c0_i32_0 : i32, i32, i32
  }
  func.func @transform_17(%arg0: i32, %arg1: i32) -> (i32, i32, i32) {
    %c0_i32 = arith.constant 0 : i32
    %c0_i32_0 = arith.constant 0 : i32
    %c0_i32_1 = arith.constant 0 : i32
    return %arg1, %c0_i32, %c0_i32_0 : i32, i32, i32
  }
  func.func @transform_18(%arg0: i32, %arg1: i32) -> (i32, i32) {
    %c0_i32 = arith.constant 0 : i32
    %c0_i32_0 = arith.constant 0 : i32
    %c0_i32_1 = arith.constant 0 : i32
    return %c0_i32, %c0_i32_0 : i32, i32
  }
  func.func @transform_19(%arg0: i32, %arg1: i32) -> (i32, i32) {
    %c0_i32 = arith.constant 0 : i32
    %c0_i32_0 = arith.constant 0 : i32
    %c0_i32_1 = arith.constant 0 : i32
    return %c0_i32, %c0_i32_0 : i32, i32
  }
  func.func @transform_20(%arg0: i32, %arg1: i32) -> (i32, i32) {
    %c0_i32 = arith.constant 0 : i32
    %c0_i32_0 = arith.constant 0 : i32
    %c0_i32_1 = arith.constant 0 : i32
    return %c0_i32, %c0_i32_0 : i32, i32
  }
  func.func @transform_21(%arg0: i32, %arg1: i32) -> (i32, i32) {
    %c0_i32 = arith.constant 0 : i32
    %c0_i32_0 = arith.constant 0 : i32
    %c0_i32_1 = arith.constant 0 : i32
    return %c0_i32, %c0_i32_0 : i32, i32
  }
  func.func @transform_22(%arg0: i32, %arg1: i32) -> (i32, i32, i32) {
    %c0_i32 = arith.constant 0 : i32
    %c0_i32_0 = arith.constant 0 : i32
    %c0_i32_1 = arith.constant 0 : i32
    return %arg0, %c0_i32, %c0_i32_0 : i32, i32, i32
  }
}

</mosaic_0001>

<bundles_post_ra>
// kernel: bert_classifier_forward.1
= control target key start
LH: loop header
LB: loop body
LE: loop exit
PB: predicated region body
PF: predicated region fallthrough
CT: control target
= control target key end

     0   :  { %s2583_s29 = smov 0   ;;  %s2585_s30 = smov 0   ;;  %s2886_s0 = inlined_call_operand.vmem [shape: f32[2,8,32], index: 0, kind: input, shape index: {}]   ;;  %s2887_s1 = inlined_call_operand.vmem [shape: f32[1,8,32], index: 1, kind: input, shape index: {}]   ;;  %s2888_s2 = inlined_call_operand.vmem [shape: f32[2,8,32], index: 2, kind: input, shape index: {}]   ;;  %s2889_s3 = inlined_call_operand.vmem [shape: f32[2,1,8], index: 3, kind: input, shape index: {}]   ;;  %s2890_s4 = inlined_call_operand.vmem [shape: f32[1,32], index: 4, kind: input, shape index: {}]   ;;  %s2891_s5 = inlined_call_operand.vmem [shape: f32[1,32], index: 5, kind: input, shape index: {}]   ;;  %s2892_s6 = inlined_call_operand.vmem [shape: bf16[2,32,96], index: 6, kind: input, shape index: {}]   ;;  %s2893_s7 = inlined_call_operand.vmem [shape: f32[2,1,96], index: 7, kind: input, shape index: {}]   ;;  %s2894_s8 = inlined_call_operand.vmem [shape: bf16[2,32,32], index: 8, kind: input, shape index: {}]   ;;  %s2895_s9 = inlined_call_operand.vmem [shape: f32[2,1,32], index: 9, kind: input, shape index: {}]   ;;  %s2896_s10 = inlined_call_operand.vmem [shape: f32[2,1,32], index: 10, kind: input, shape index: {}]   ;;  %s2897_s11 = inlined_call_operand.vmem [shape: f32[2,1,32], index: 11, kind: input, shape index: {}]   ;;  %s2898_s12 = inlined_call_operand.vmem [shape: bf16[2,32,64], index: 12, kind: input, shape index: {}]   ;;  %s2899_s13 = inlined_call_operand.vmem [shape: f32[2,1,64], index: 13, kind: input, shape index: {}]   ;;  %s2900_s14 = inlined_call_operand.vmem [shape: bf16[2,64,32], index: 14, kind: input, shape index: {}]   ;;  %s2901_s15 = inlined_call_operand.vmem [shape: f32[2,1,32], index: 15, kind: input, shape index: {}]   ;;  %s2902_s16 = inlined_call_operand.vmem [shape: f32[2,1,32], index: 16, kind: input, shape index: {}]   ;;  %s2903_s17 = inlined_call_operand.vmem [shape: f32[2,1,32], index: 17, kind: input, shape index: {}]   ;;  %s2904_s18 = inlined_call_operand.vmem [shape: bf16[32,32], index: 18, kind: input, shape index: {}]   ;;  %s2905_s19 = inlined_call_operand.vmem [shape: f32[1,32], index: 19, kind: input, shape index: {}]   ;;  %s2906_s20 = inlined_call_operand.vmem [shape: bf16[32,1], index: 20, kind: input, shape index: {}]   ;;  %s2907_s21 = inlined_call_operand.<no memory space> [shape: f32[1,1], index: 21, kind: input, shape index: {}]   ;;  %s2908_s22 = inlined_call_operand.vmem [shape: f32[2,1,1], index: 22, kind: output, shape index: {}]  }
   0x1   :  { %2916 = sst [smem:[#allocation11_spill]] %s2886_s0  ;;  %v27_v0 = vstv %s2907_s21  ;;  %s2589_s0 = smov 0  }
   0x2   :  { %2917 = sst [smem:[#allocation12_spill]] %s2887_s1  ;;  %28 = vst [vmem:[#allocation3] sm:$0x1] %v27_v0  ;;  %s2591_s23 = smov 0  }
   0x3   :  { %2918 = sst [smem:[#allocation13_spill]] %s2888_s2 }
   0x4   :  { %2919 = sst [smem:[#allocation14_spill]] %s2889_s3 }
   0x5   :  { %2920 = sst [smem:[#allocation15_spill]] %s2890_s4  ;;  %s2587_s4 = smov 0  }
   0x6   :  { %2921 = sst [smem:[#allocation16_spill]] %s2891_s5 }
   0x7   :  { %2922 = sst [smem:[#allocation17_spill]] %s2892_s6 }
   0x8   :  { %2923 = sst [smem:[#allocation18_spill]] %s2894_s8 }
   0x9   :  { %2924 = sst [smem:[#allocation19_spill]] %s2897_s11 }
   0xa   :  { %2925 = sst [smem:[#allocation20_spill]] %s2898_s12 }
   0xb   :  { %2926 = sst [smem:[#allocation21_spill]] %s2899_s13 }
   0xc   :  { %2927 = sst [smem:[#allocation22_spill]] %s2903_s17 }
   0xd   :  { %2928 = sst [smem:[#allocation23_spill]] %s2904_s18 }
   0xe   :  { %2929 = sst [smem:[#allocation24_spill]] %s2905_s19 }
   0xf   :  { %2930 = sst [smem:[#allocation25_spill]] %s2906_s20 }
  0x10   :  { %2931 = sst [smem:[#allocation26_spill]] %s2908_s22 }
  0x11 LB: > { %2932 = sst [smem:[#allocation4_spill]] %s2429_s29  ;;  %s43_s21 = sadd.s32 1, %s2437_s4  ;;  %s2445_s23 = sphi %s2591_s23, %s34_s23   ;;  %s2441_s0 = sphi %s2589_s0, %s2973_s0   ;;  %s2437_s4 = sphi %s2587_s4, %s2972_s4   ;;  %s2433_s30 = sphi %s2585_s30, %s2971_s30   ;;  %s2429_s29 = sphi %s2583_s29, %s2970_s29  }
  0x12   : > { %2933 = sst [smem:[#allocation5_spill]] %s2437_s4  ;;  %s46_s1 = sadd.s32 1, %s2441_s0 }
  0x13   : > { %2934 = sst [smem:[#allocation6_spill]] %s2441_s0  ;;  %p44_p0 = scmp.ge.s32.totalorder %s43_s21, 2 }
  0x14   : > { %2935 = sst [smem:[#allocation7_spill]] %s2445_s23  ;;  %p2115_p1 = scmp.ge.s32.totalorder %s2445_s23, 1 }
  0x15   : > { %p746_p2 = scmp.lt.s32.totalorder %s2445_s23, 5  ;;  %s2975_s21 = smov (%p44_p0, %s43_s21), 0 }
  0x16   : > { %2936 = sst [smem:[#allocation8_spill]] %s2975_s21  ;;  %s2977_s1 = smov (!%p44_p0, %s46_s1), %s2441_s0 }
  0x17   : > { %p747_p3 = pnand %p2115_p1, %p746_p2  ;;  %p48_p4 = scmp.ge.s32.totalorder %s2977_s1, 2 }
  0x19   : > { %s2979_s1 = smov (%p48_p4, %s2977_s1), 0  ;;  %750 = sbr.rel (%p747_p3) target bundleno = 3388 (0xd3c), region = 108 }
  0x1a   : > { %2937 = sst [smem:[#allocation9_spill]] %s2979_s1 }
  0x20   : > { %p856_p5 = scmp.lt.s32.totalorder %s2433_s30, 1  ;;  %p867_p6 = scmp.lt.s32.totalorder %s2429_s29, 1 }
  0x21   : > { %s2939_s28 = sld [smem:[#allocation11_spill]]  ;;  %s2940_s4 = sld [smem:[#allocation13_spill]] }
  0x22   : > { %s2981_s30 = smov (!%p856_p5, %s2433_s30), 1  ;;  %s2941_s6 = sld [smem:[#allocation17_spill]] }
  0x23   : > { %s2619_s5 = scalar_select %p867_p6, %s2429_s29, 1 }
  0x24   : > { %s2116_s24 = sshll.u32 %s2981_s30, 3  ;;  %s2942_s8 = sld [smem:[#allocation18_spill]] }
  0x25   : > { %s2169_s19 = sshll.u32 %s2619_s5, 4  ;;  %s2945_s12 = sld [smem:[#allocation20_spill]] }
  0x26   : > { %s904_s18 = scalar_lea.vmem %s2901_s15, %s2619_s5  ;;  %s907_s17 = scalar_lea.vmem %s2902_s16, %s2619_s5 }
  0x27   : > { %s859_s1 = scalar_lea.vmem %s2939_s28, %s2116_s24  ;;  %s863_s23 = scalar_lea.vmem %s2940_s4, %s2116_s24 }
  0x28   : > { %s2640_s25 = scalar_lea.vmem %s2941_s6, %s2169_s19  ;;  %s2947_s24 = sld [smem:[#allocation22_spill]] }
  0x29   : > { %s2949_s11 = sld [smem:[#allocation4_spill]] }
  0x2a   : > { %s2645_s27 = scalar_lea.vmem %s2942_s8, %s2169_s19  ;;  %s2948_s8 = sld [smem:[#allocation26_spill]] }
  0x2b   : > { %2943 = sst [smem:[#allocation10_spill]] %s2645_s27  ;;  %s2662_s6 = scalar_lea.vmem %s2945_s12, %s2169_s19 }
  0x2c   : > { %s2172_s27 = sshll.u32 %s2619_s5, 5 }
  0x2d   : > { %s2672_s0 = scalar_lea.vmem %s2900_s14, %s2172_s27 }
  0x2e   : > { %s910_s12 = scalar_lea.vmem %s2947_s24, %s2619_s5 }
  0x2f   : > { %p2126_p7 = scmp.ne.s32.totalorder %s2949_s11, 0 }
  0x30   : > { %s913_s13 = scalar_lea.vmem %s2948_s8, %s2981_s30  ;;  %v919_v1 = vld [vmem:[%s859_s1] sm:$0xff] (!%p2126_p7)  ;;  %s2950_s28 = sld [smem:[#allocation12_spill]] (!%p2126_p7)  ;;  %vm926_vm0 = vcmask (!%p2126_p7), 261120  }
  0x31   : > { %918 = sbr.rel (%p2126_p7) target bundleno = 373 (0x175), region = 112  ;;  %v922_v3 = vld [vmem:[%s863_s23] sm:$0xff] (!%p2126_p7)  ;;  %s2951_s29 = sld [smem:[#allocation15_spill]] (!%p2126_p7) }
  0x32   : > { %s2952_s24 = sld [smem:[#allocation16_spill]] (!%p2126_p7) }
  0x36   : > { %v920_v2 = vld [vmem:[%s2950_s28] sm:$0xff] (!%p2126_p7) }
  0x37   : > { %v921_v4 = vadd.f32 (!%p2126_p7), %v920_v2, %v919_v1  ;;  %v2127_v16 = vld [vmem:[%s2951_s29] ss:$0 sm:$0xff] (!%p2126_p7) }
  0x38   : > { %v2128_v18 = vld [vmem:[%s2952_s24] ss:$0 sm:$0xff] }
  0x39   : > { %v923_v5 = vadd.f32 %v922_v3, %v921_v4 }
  0x3b   : > { %v927_v6 = vsel %vm926_vm0, %v923_v5, 0.0 }
  0x3c   : > { %928 = vadd.xlane.f32.xlu0 %v927_v6 }
  0xc9   : > { %v929_v7 = vpop.xlane.xlu0 %928 }
  0xca   : > { %v931_v8 = vmul.f32 0.03125, %v929_v7 }
  0xcc   : > { %v932_v9 = vsub.f32 %v923_v5, %v931_v8 }
  0xce   : > { %v933_v10 = vmul.f32 %v932_v9, %v932_v9 }
  0xd0   : > { %v934_v11 = vsel %vm926_vm0, %v933_v10, 0.0 }
  0xd1   : > { %935 = vadd.xlane.f32.xlu0 %v934_v11 }
 0x15e   : > { %v936_v12 = vpop.xlane.xlu0 %935 }
 0x15f   : > { %v937_v13 = vmul.f32 0.03125, %v936_v12 }
 0x161   : > { %v938_v14 = vadd.f32 1e-12, %v937_v13 }
 0x163   : > { %2367 = vrsqrt.f32 %v938_v14 }
 0x16d   : > { %v2368_v15 = vpop.eup %2367 }
 0x16e   : > { %v940_v17 = vmul.f32 %v2368_v15, %v932_v9 }
 0x170   : > { %v947_v19 = vmul.f32 %v2127_v16, %v940_v17 }
 0x172   : > { %v954_v20 = vadd.f32 %v2128_v18, %v947_v19 }
 0x174   : > { %955 = vst.msk [vmem:[#allocation2] sm:$0xff] %vm926_vm0, %v954_v20 }
 0x175 PF: > { %v2369_v21 = vld [vmem:[%s2640_s25] sm:$0xff]   ;;  %v2447_v22 = vmov 0.0   ;;  %v2370_v23 = vld [vmem:[%s2640_s25 + $0x8] sm:$0xff]   ;;  %vm2448_vm1 = vmmov 0   ;;  %vm981_vm2 = vcmask 261120   ;;  %s2953_s21 = scalar_lea.vmem %s2893_s7, %s2619_s5  ;;  %s2449_s20 = smov 96  }
 0x176   : > { %2209 = vmatprep.subr.bf16.mxu0 %v2447_v22  ;;  %2217 = vmatprep.subr.bf16.mxu1 %v2447_v22  ;;  %v2129_v26 = vld [vmem:[%s2953_s21] ss:$0 sm:$0xff]  ;;  %s2450_s19 = smov 120   ;;  %s2451_s22 = smov 88   ;;  %vm1038_vm3 = vcmask 64512   ;;  %vm1102_vm4 = vcmask 1043456  }
 0x177   : > { %2210 = vmatpush3.bf16.msra.mxu0 %v2369_v21  ;;  %2213 = vmatprep.mubr.msk.bf16.mxu0 %vm2448_vm1, %v2447_v22  ;;  %s2452_s2 = smov 80   ;;  %s2453_s26 = smov 112   ;;  %vm1490_vm5 = vcmask 130048   ;;  %vm1492_vm6 = vcmask 195584   ;;  %vm1708_vm7 = vcmask 523264  }
 0x178   : > { %2211 = vmatprep.subr.bf16.mxu0 %v2447_v22  ;;  %2219 = vmatprep.mubr.msk.bf16.mxu1 %vm2448_vm1, %v2447_v22  ;;  %s2454_s27 = smov 72   ;;  %s2455_s3 = smov 104  }
 0x179   : > { %s2954_s11 = sld [smem:[#allocation14_spill]]  ;;  %s2456_s23 = smov 56  }
 0x17a   : > { %s2457_s1 = smov 64   ;;  %s2458_s24 = smov 40  }
 0x17b   : > { %v2709_v24 = vld [vmem:[#allocation2] sm:$0xff]  ;;  %2212 = vmatpush3.bf16.msra.mxu0 %v2370_v23  ;;  %s2459_s25 = smov 48   ;;  %s2956_s4 = sld [smem:[#allocation10_spill]] }
 0x17c   : > { %v957_v25 = vpack.c.bf16 %v2709_v24, %v2709_v24  ;;  %2223 = vmatprep.subr.bf16.mxu0 %v2447_v22  ;;  %s2460_s21 = smov 8   ;;  %s2958_s28 = scalar_lea.vmem %s2896_s10, %s2619_s5 }
 0x17e   : > { %2214 = vmatmul.mubr.msk.bf16.vlgmr.msra.gmra.mrb[0].mxu0 %vm981_vm2, %v957_v25 }
 0x17f   : > { %2225 = vmatprep.mubr.msk.bf16.mxu0 %vm2448_vm1, %v2447_v22  ;;  %s2955_s29 = scalar_lea.vmem %s2954_s11, %s2981_s30 }
 0x180   : > { %v2133_v46 = vld [vmem:[%s2955_s29] ss:$0 sm:$0xff]  ;;  %s2959_s29 = sld [smem:[#allocation19_spill]] }
 0x251   : > { %v1019_v27 = vpop.f32.mrb[0].mxu0 }
 0x252   : > { %v1020_v28 = vadd.f32 %v2129_v26, %v1019_v27  ;;  %v2215_v29 = vpop.f32.mrb[1].mxu0 }
 0x253   : > { %v1022_v30 = vpop.f32.mrb[2].mxu0 }
 0x254   : > { %v1026_v31 = vmul.f32 0.35355338, %v1020_v28  ;;  %v2725_v32 = vpack.c.bf16 %v1020_v28, %v1020_v28  ;;  %v2216_v33 = vpop.f32.mrb[3].mxu0 }
 0x256   : > { %v1027_v34 = vpack.c.bf16 %v1026_v31, %v1026_v31  ;;  %1036 = vrot.lane.b32.xlu0 %v2725_v32, %s2449_s20  ;;  %s2461_s20 = smov 16  }
 0x258   : > { %1147 = vrot.lane.b32.xlu1 %v1027_v34, %s2450_s19  ;;  %s2462_s19 = smov 24  }
 0x25a   : > { %1149 = vrot.lane.b32.xlu0 %v2725_v32, %s2451_s22 }
 0x25c   : > { %1259 = vrot.lane.b32.xlu1 %v2725_v32, %s2452_s2  ;;  %s2964_s2 = sld [smem:[#allocation4_spill]] }
 0x25e   : > { %1257 = vrot.lane.b32.xlu0 %v1027_v34, %s2453_s26  ;;  %s2957_s26 = scalar_lea.vmem %s2895_s9, %s2619_s5 }
 0x260   : > { %1369 = vrot.lane.b32.xlu1 %v2725_v32, %s2454_s27 }
 0x262   : > { %1367 = vrot.lane.b32.xlu0 %v1027_v34, %s2455_s3  ;;  %p2160_p8 = scmp.ne.s32.totalorder %s2964_s2, 1 }
 0x263   : > { %s2965_s3 = sld [smem:[#allocation23_spill]] (!%p2160_p8)  ;;  %vm2464_vm8 = vmmov (!%p2160_p8), 0   ;;  %s2966_s8 = sld [smem:[#allocation25_spill]] (!%p2160_p8)  ;;  %vm1910_vm9 = vcmask (!%p2160_p8), 0  }
 0x2c8   : > { %v1037_v35 = vpop.permute.xlu0 %1036 }
 0x2c9   : > { %v1043_v36 = vsel %vm1038_vm3, %v1037_v35, 0 }
 0x2ca   : > { %2218 = vmatpush3.bf16.xpose.msra.mxu1 %v1043_v36  ;;  %v1148_v38 = vpop.permute.xlu1 %1147 }
 0x2cb   : > { %2229 = vmatprep.subr.bf16.mxu1 %v2447_v22 }
 0x2cc   : > { %v1150_v37 = vpop.permute.xlu0 %1149 }
 0x2cd   : > { %v1155_v39 = vsel %vm1038_vm3, %v1150_v37, 0 }
 0x2ce   : > { %v1260_v40 = vpop.permute.xlu1 %1259 }
 0x2cf   : > { %v1265_v41 = vsel %vm1038_vm3, %v1260_v40, 0 }
 0x2d0   : > { %v1258_v43 = vpop.permute.xlu0 %1257 }
 0x2d1   : > { %2220 = vmatmul.mubr.msk.bf16.vlgmr.msra.gmra.mrb[0].mxu1 %vm1038_vm3, %v1027_v34 }
 0x2d2   : > { %2230 = vmatpush3.bf16.xpose.msra.mxu1 %v1155_v39  ;;  %2231 = vmatprep.mubr.msk.bf16.mxu1 %vm2448_vm1, %v2447_v22  ;;  %v1370_v42 = vpop.permute.xlu1 %1369 }
 0x2d3   : > { %2241 = vmatprep.subr.bf16.mxu1 %v2447_v22  ;;  %v1375_v44 = vsel %vm1038_vm3, %v1370_v42, 0 }
 0x2d4   : > { %v1368_v45 = vpop.permute.xlu0 %1367 }
 0x2d9   : > { %2232 = vmatmul.mubr.msk.bf16.vlgmr.msra.gmra.mrb[4].mxu1 %vm1038_vm3, %v1148_v38 }
 0x2da   : > { %2242 = vmatpush3.bf16.xpose.msra.mxu1 %v1265_v41  ;;  %2243 = vmatprep.mubr.msk.bf16.mxu1 %vm2448_vm1, %v2447_v22 }
 0x2db   : > { %2253 = vmatprep.subr.bf16.mxu1 %v2447_v22 }
 0x2e1   : > { %2244 = vmatmul.mubr.msk.bf16.vlgmr.msra.gmra.mrb[8].mxu1 %vm1038_vm3, %v1258_v43 }
 0x2e2   : > { %2254 = vmatpush3.bf16.xpose.msra.mxu1 %v1375_v44  ;;  %2255 = vmatprep.mubr.msk.bf16.mxu1 %vm2448_vm1, %v2447_v22 }
 0x2e3   : > { %2265 = vmatprep.subr.bf16.mxu1 %v2447_v22 }
 0x2e9   : > { %2256 = vmatmul.mubr.msk.bf16.vlgmr.msra.gmra.mrb[12].mxu1 %vm1038_vm3, %v1368_v45 }
 0x2ea   : > { %2269 = vmatprep.mubr.msk.bf16.mxu1 %vm2448_vm1, %v2447_v22 }
 0x3a4   : > { %v1079_v47 = vpop.f32.mrb[0].mxu1 }
 0x3a5   : > { %v1080_v48 = vadd.f32 %v2133_v46, %v1079_v47  ;;  %v2221_v49 = vpop.f32.mrb[1].mxu1 }
 0x3a6   : > { %v1082_v50 = vpop.f32.mrb[2].mxu1 }
 0x3a7   : > { %v2222_v51 = vpop.f32.mrb[3].mxu1  ;;  %v1085_v52 = vsel %vm1038_vm3, %v1080_v48, -inf }
 0x3a8   : > { %1086 = vmax.xlane.f32.xlu1 %v1085_v52 }
 0x3ac   : > { %v1191_v53 = vpop.f32.mrb[4].mxu1 }
 0x3ad   : > { %v1192_v54 = vadd.f32 %v2133_v46, %v1191_v53  ;;  %v2233_v55 = vpop.f32.mrb[5].mxu1 }
 0x3ae   : > { %v1194_v56 = vpop.f32.mrb[6].mxu1 }
 0x3af   : > { %v2234_v57 = vpop.f32.mrb[7].mxu1  ;;  %v1197_v58 = vsel %vm1038_vm3, %v1192_v54, -inf }
 0x3b0   : > { %1198 = vmax.xlane.f32.xlu0 %v1197_v58 }
 0x3b4   : > { %v1301_v59 = vpop.f32.mrb[8].mxu1 }
 0x3b5   : > { %v1302_v60 = vadd.f32 %v2133_v46, %v1301_v59  ;;  %v2245_v61 = vpop.f32.mrb[9].mxu1 }
 0x3b6   : > { %v1304_v62 = vpop.f32.mrb[10].mxu1  ;;  %v2371_v61 = vld [vmem:[%s2956_s4] sm:$0xff]  }
 0x3b7   : > { %v2246_v63 = vpop.f32.mrb[11].mxu1  ;;  %v1307_v0 = vsel %vm1038_vm3, %v1302_v60, -inf  ;;  %2266 = vmatpush3.bf16.msra.mxu1 %v2371_v61  ;;  %v2372_v62 = vld [vmem:[%s2956_s4 + $0x8] sm:$0xff]  }
 0x3b8   : > { %1308 = vmax.xlane.f32.xlu0 %v1307_v0  ;;  %2267 = vmatprep.subr.bf16.mxu1 %v2447_v22 }
 0x3bb   : > { %2268 = vmatpush3.bf16.msra.mxu1 %v2372_v62 }
 0x3bc   : > { %v1411_v1 = vpop.f32.mrb[12].mxu1  ;;  %2281 = vmatprep.subr.bf16.mxu1 %v2447_v22 }
 0x3bd   : > { %v1412_v2 = vadd.f32 %v2133_v46, %v1411_v1  ;;  %v2257_v3 = vpop.f32.mrb[13].mxu1 }
 0x3be   : > { %v1414_v4 = vpop.f32.mrb[14].mxu1 }
 0x3bf   : > { %v2258_v5 = vpop.f32.mrb[15].mxu1  ;;  %v1417_v6 = vsel %vm1038_vm3, %v1412_v2, -inf }
 0x3c0   : > { %1418 = vmax.xlane.f32.xlu1 %v1417_v6 }
 0x435   : > { %v1087_v7 = vpop.xlane.xlu1 %1086 }
 0x436   : > { %v1088_v8 = vsub.f32 %v1080_v48, %v1087_v7 }
 0x438   : > { %v1089_v9 = vmul.f32 1.442695, %v1088_v8 }
 0x43a   : > { %2379 = vpow2.f32 %v1089_v9 }
 0x43d   : > { %v1199_v10 = vpop.xlane.xlu0 %1198 }
 0x43e   : > { %v1200_v11 = vsub.f32 %v1192_v54, %v1199_v10 }
 0x440   : > { %v1201_v12 = vmul.f32 1.442695, %v1200_v11 }
 0x442   : > { %2381 = vpow2.f32 %v1201_v12 }
 0x444   : > { %v2380_v13 = vpop.eup %2379 }
 0x445   : > { %v1309_v14 = vpop.xlane.xlu0 %1308  ;;  %v1091_v15 = vsel %vm1038_vm3, %v2380_v13, 0.0 }
 0x446   : > { %v1310_v16 = vsub.f32 %v1302_v60, %v1309_v14  ;;  %1092 = vadd.xlane.f32.xlu0 %v1091_v15  ;;  %v2142_v14 = vld [vmem:[%s2957_s26] ss:$0 sm:$0xff] }
 0x448   : > { %v1311_v17 = vmul.f32 1.442695, %v1310_v16 }
 0x44a   : > { %2383 = vpow2.f32 %v1311_v17 }
 0x44c   : > { %v2382_v18 = vpop.eup %2381 }
 0x44d   : > { %v1203_v19 = vsel %vm1038_vm3, %v2382_v18, 0.0  ;;  %v1419_v23 = vpop.xlane.xlu1 %1418 }
 0x44e   : > { %1204 = vadd.xlane.f32.xlu1 %v1203_v19  ;;  %v1420_v25 = vsub.f32 %v1412_v2, %v1419_v23 }
 0x450   : > { %v1421_v26 = vmul.f32 1.442695, %v1420_v25 }
 0x452   : > { %2385 = vpow2.f32 %v1421_v26 }
 0x454   : > { %v2384_v20 = vpop.eup %2383 }
 0x455   : > { %v1313_v21 = vsel %vm1038_vm3, %v2384_v20, 0.0 }
 0x456   : > { %1314 = vadd.xlane.f32.xlu0 %v1313_v21 }
 0x45c   : > { %v2386_v27 = vpop.eup %2385 }
 0x45d   : > { %v1423_v28 = vsel %vm1038_vm3, %v2386_v27, 0.0 }
 0x45f   : > { %1209 = vrot.lane.b32.xlu1 %v2725_v32, %s2456_s23  ;;  %s2960_s23 = scalar_lea.vmem %s2959_s29, %s2619_s5 }
 0x46c   : > { %1097 = vrot.lane.b32.xlu0 %v2725_v32, %s2457_s1  ;;  %s2967_s1 = sld [smem:[#allocation24_spill]] (!%p2160_p8) }
 0x470   : > { %1429 = vrot.lane.b32.xlu0 %v2725_v32, %s2458_s24  ;;  %s2961_s24 = sld [smem:[#allocation21_spill]] }
 0x483   : > { %1424 = vadd.xlane.f32.xlu1 %v1423_v28 }
 0x494   : > { %1319 = vrot.lane.b32.xlu1 %v2725_v32, %s2459_s25  ;;  %s2962_s25 = scalar_lea.vmem %s2961_s24, %s2619_s5 }
 0x4d3   : > { %v1093_v29 = vpop.xlane.xlu0 %1092 }
 0x4d4   : > { %2387 = vrcp.f32 %v1093_v29  ;;  %v2373_v29 = vld [vmem:[%s2662_s6] sm:$0xff]  }
 0x4db   : > { %v1205_v30 = vpop.xlane.xlu1 %1204 }
 0x4dc   : > { %2389 = vrcp.f32 %v1205_v30  ;;  %v2374_v30 = vld [vmem:[%s2662_s6 + $0x8] sm:$0xff]  }
 0x4de   : > { %v2388_v31 = vpop.eup %2387 }
 0x4df   : > { %v1095_v34 = vmul.f32 %v2388_v31, %v2380_v13  ;;  %v1210_v37 = vpop.permute.xlu1 %1209 }
 0x4e0   : > { %v1215_v40 = vsel %vm1102_vm4, %v1210_v37, 0  ;;  %v2147_v37 = vld [vmem:[%s2960_s23] ss:$0 sm:$0xff] }
 0x4e1   : > { %v1096_v38 = vpack.c.bf16 %v1095_v34, %v1095_v34 }
 0x4e3   : > { %v1315_v33 = vpop.xlane.xlu0 %1314 }
 0x4e4   : > { %2391 = vrcp.f32 %v1315_v33 }
 0x4e6   : > { %v2390_v39 = vpop.eup %2389 }
 0x4e7   : > { %v1098_v35 = vpop.permute.xlu0 %1097  ;;  %v1207_v32 = vmul.f32 %v2390_v39, %v2382_v18 }
 0x4e8   : > { %v1104_v36 = vsel %vm1102_vm4, %v1098_v35, 0  ;;  %v2146_v35 = vld [vmem:[%s2958_s28] ss:$0 sm:$0xff] }
 0x4e9   : > { %2224 = vmatpush3.bf16.msra.mxu0 %v1104_v36  ;;  %v1208_v41 = vpack.c.bf16 %v1207_v32, %v1207_v32  ;;  %v2375_v32 = vld [vmem:[%s2672_s0] sm:$0xff]  }
 0x4ea   : > { %2235 = vmatprep.subr.bf16.mxu0 %v2447_v22 }
 0x4eb   : > { %v1430_v47 = vpop.permute.xlu0 %1429 }
 0x4ec   : > { %2226 = vmatmul.mubr.msk.bf16.vlgmr.msra.gmra.mrb[4].mxu0 %vm1038_vm3, %v1096_v38  ;;  %v1435_v49 = vsel %vm1102_vm4, %v1430_v47, 0 }
 0x4ed   : > { %2236 = vmatpush3.bf16.msra.mxu0 %v1215_v40  ;;  %2237 = vmatprep.mubr.msk.bf16.mxu0 %vm2448_vm1, %v2447_v22 }
 0x4ee   : > { %2247 = vmatprep.subr.bf16.mxu0 %v2447_v22  ;;  %v2392_v42 = vpop.eup %2391 }
 0x4ef   : > { %v1317_v44 = vmul.f32 %v2392_v42, %v2384_v20  ;;  %v2377_v42 = vld [vmem:[%s2672_s0 + $0x10] sm:$0xff]  }
 0x4f1   : > { %v1318_v48 = vpack.c.bf16 %v1317_v44, %v1317_v44  ;;  %v2148_v44 = vld [vmem:[%s2962_s25] ss:$0 sm:$0xff] }
 0x4f4   : > { %2238 = vmatmul.mubr.msk.bf16.vlgmr.msra.gmra.mrb[8].mxu0 %vm1038_vm3, %v1208_v41  ;;  %v2376_v41 = vld [vmem:[%s2672_s0 + $0x8] sm:$0xff]  }
 0x4f5   : > { %2249 = vmatprep.mubr.msk.bf16.mxu0 %vm2448_vm1, %v2447_v22 }
 0x510   : > { %v1425_v43 = vpop.xlane.xlu1 %1424 }
 0x511   : > { %2393 = vrcp.f32 %v1425_v43  ;;  %v2378_v43 = vld [vmem:[%s2672_s0 + $0x18] sm:$0xff]  }
 0x514   : > { %v1320_v45 = vpop.permute.xlu1 %1319 }
 0x515   : > { %v1325_v46 = vsel %vm1102_vm4, %v1320_v45, 0 }
 0x516   : > { %2248 = vmatpush3.bf16.msra.mxu0 %v1325_v46 }
 0x517   : > { %2259 = vmatprep.subr.bf16.mxu0 %v2447_v22 }
 0x519   : > { %2250 = vmatmul.mubr.msk.bf16.vlgmr.msra.gmra.mrb[12].mxu0 %vm1038_vm3, %v1318_v48 }
 0x51a   : > { %2260 = vmatpush3.bf16.msra.mxu0 %v1435_v49  ;;  %2261 = vmatprep.mubr.msk.bf16.mxu0 %vm2448_vm1, %v2447_v22 }
 0x51b   : > { %v2394_v50 = vpop.eup %2393  ;;  %2273 = vmatprep.subr.bf16.mxu0 %v2447_v22 }
 0x51c   : > { %v1427_v51 = vmul.f32 %v2394_v50, %v2386_v27 }
 0x51e   : > { %v1428_v52 = vpack.c.bf16 %v1427_v51, %v1427_v51 }
 0x521   : > { %2262 = vmatmul.mubr.msk.bf16.vlgmr.msra.gmra.mrb[16].mxu0 %vm1038_vm3, %v1428_v52 }
 0x522   : > { %2277 = vmatprep.mubr.msk.bf16.mxu0 %vm2448_vm1, %v2447_v22  ;;  %2274 = vmatpush3.bf16.msra.mxu0 %v2373_v29 }
 0x523   : > { %2275 = vmatprep.subr.bf16.mxu0 %v2447_v22 }
 0x526   : > { %2276 = vmatpush3.bf16.msra.mxu0 %v2374_v30 }
 0x5bf   : > { %v1140_v53 = vpop.f32.mrb[4].mxu0 }
 0x5c0   : > { %v2227_v54 = vpop.f32.mrb[5].mxu0 }
 0x5c1   : > { %v1143_v55 = vpop.f32.mrb[6].mxu0 }
 0x5c2   : > { %v2228_v56 = vpop.f32.mrb[7].mxu0 }
 0x5c7   : > { %v1251_v57 = vpop.f32.mrb[8].mxu0 }
 0x5c8   : > { %1478 = vrot.lane.b32.xlu1 %v1251_v57, %s2460_s21  ;;  %v2239_v58 = vpop.f32.mrb[9].mxu0 }
 0x5c9   : > { %v1254_v59 = vpop.f32.mrb[10].mxu0 }
 0x5ca   : > { %v2240_v60 = vpop.f32.mrb[11].mxu0  ;;  %v2152_v59 = vld [vmem:[%s904_s18] ss:$0 sm:$0xff] }
 0x5ec   : > { %v1361_v63 = vpop.f32.mrb[12].mxu0 }
 0x5ed   : > { %1482 = vrot.lane.b32.xlu0 %v1361_v63, %s2461_s20  ;;  %v2251_v0 = vpop.f32.mrb[13].mxu0 }
 0x5ee   : > { %v1364_v1 = vpop.f32.mrb[14].mxu0 }
 0x5ef   : > { %v2252_v2 = vpop.f32.mrb[15].mxu0 }
 0x5f4   : > { %v1471_v3 = vpop.f32.mrb[16].mxu0 }
 0x5f5   : > { %1486 = vrot.lane.b32.xlu1 %v1471_v3, %s2462_s19  ;;  %v2263_v4 = vpop.f32.mrb[17].mxu0 }
 0x5f6   : > { %v1474_v5 = vpop.f32.mrb[18].mxu0 }
 0x5f7   : > { %v2264_v6 = vpop.f32.mrb[19].mxu0 }
 0x63a   : > { %v1479_v7 = vpop.permute.xlu1 %1478 }
 0x63b   : > { %v1489_v9 = vsel %vm1038_vm3, %v1140_v53, %v1479_v7 }
 0x65f   : > { %v1483_v8 = vpop.permute.xlu0 %1482 }
 0x660   : > { %v1491_v10 = vsel %vm1490_vm5, %v1489_v9, %v1483_v8 }
 0x667   : > { %v1487_v11 = vpop.permute.xlu1 %1486 }
 0x668   : > { %v1493_v12 = vsel %vm1492_vm6, %v1491_v10, %v1487_v11 }
 0x669   : > { %v1494_v13 = vpack.c.bf16 %v1493_v12, %v1493_v12  ;;  %v2158_v12 = vld [vmem:[%s907_s17] ss:$0 sm:$0xff] }
 0x66b   : > { %2270 = vmatmul.mubr.msk.bf16.vlgmr.msra.gmra.mrb[16].mxu1 %vm981_vm2, %v1494_v13 }
 0x66c   : > { %2289 = vmatprep.mubr.msk.bf16.mxu1 %vm2448_vm1, %v2447_v22  ;;  %2282 = vmatpush3.bf16.msra.mxu1 %v2375_v32 }
 0x66d   : > { %2283 = vmatprep.subr.bf16.mxu1 %v2447_v22 }
 0x670   : > { %2284 = vmatpush3.bf16.msra.mxu1 %v2376_v41 }
 0x671   : > { %2285 = vmatprep.subr.bf16.mxu1 %v2447_v22 }
 0x674   : > { %2286 = vmatpush3.bf16.msra.mxu1 %v2377_v42 }
 0x675   : > { %2287 = vmatprep.subr.bf16.mxu1 %v2447_v22 }
 0x678   : > { %2288 = vmatpush3.bf16.msra.mxu1 %v2378_v43 }
 0x73e   : > { %v1555_v15 = vpop.f32.mrb[16].mxu1 }
 0x73f   : > { %v1556_v16 = vadd.f32 %v2142_v14, %v1555_v15  ;;  %v2271_v17 = vpop.f32.mrb[17].mxu1  ;;  %v2159_v14 = vld [vmem:[%s910_s12] ss:$0 sm:$0xff] }
 0x740   : > { %v1558_v18 = vpop.f32.mrb[18].mxu1  ;;  %v2401_v17 = vld [vmem:[%s2965_s3] sm:$0xff] (!%p2160_p8)  }
 0x741   : > { %v2272_v19 = vpop.f32.mrb[19].mxu1  ;;  %v1561_v20 = vadd.f32 %v1556_v16, %v2709_v24  ;;  %v2463_v18 = vmov (!%p2160_p8), 0.0  }
 0x742   : > { %2293 = vmatprep.subr.bf16.mxu0 (!%p2160_p8), %v2463_v18  ;;  %2301 = vmatprep.subr.bf16.mxu1 (!%p2160_p8), %v2463_v18  ;;  %v2402_v19 = vld [vmem:[%s2965_s3 + $0x8] sm:$0xff] (!%p2160_p8)  }
 0x743   : > { %v1564_v21 = vsel %vm981_vm2, %v1561_v20, 0.0 }
 0x744   : > { %1565 = vadd.xlane.f32.xlu0 %v1564_v21  ;;  %v2403_v21 = vld [vmem:[%s2966_s8] sm:$0xff] (!%p2160_p8)  }
 0x7d1   : > { %v1566_v23 = vpop.xlane.xlu0 %1565 }
 0x7d2   : > { %v1568_v25 = vmul.f32 0.03125, %v1566_v23  ;;  %v2404_v23 = vld [vmem:[%s2966_s8 + $0x8] sm:$0xff] (!%p2160_p8)  }
 0x7d4   : > { %v1569_v26 = vsub.f32 %v1561_v20, %v1568_v25  ;;  %v1792_v25 = vld [vmem:[%s2967_s1] sm:$0x1] (!%p2160_p8) }
 0x7d6   : > { %v1570_v27 = vmul.f32 %v1569_v26, %v1569_v26 }
 0x7d8   : > { %v1571_v28 = vsel %vm981_vm2, %v1570_v27, 0.0 }
 0x7d9   : > { %1572 = vadd.xlane.f32.xlu1 %v1571_v28 }
 0x866   : > { %v1573_v24 = vpop.xlane.xlu1 %1572 }
 0x867   : > { %v1574_v31 = vmul.f32 0.03125, %v1573_v24 }
 0x869   : > { %v1575_v33 = vadd.f32 1e-12, %v1574_v31 }
 0x86b   : > { %2395 = vrsqrt.f32 %v1575_v33  ;;  %v1854_v33 = vld [vmem:[#allocation3] sm:$0x1] (!%p2160_p8) }
 0x875   : > { %v2396_v34 = vpop.eup %2395 }
 0x876   : > { %v1577_v36 = vmul.f32 %v2396_v34, %v1569_v26 }
 0x878   : > { %v1584_v38 = vmul.f32 %v2146_v35, %v1577_v36 }
 0x87a   : > { %v1591_v39 = vadd.f32 %v2147_v37, %v1584_v38 }
 0x87c   : > { %v1592_v40 = vpack.c.bf16 %v1591_v39, %v1591_v39 }
 0x87e   : > { %2278 = vmatmul.mubr.msk.bf16.vlgmr.msra.gmra.mrb[20].mxu0 %vm981_vm2, %v1592_v40 }
 0x87f   : > { %2294 = vmatpush3.bf16.msra.mxu0 (!%p2160_p8), %v2401_v17  ;;  %2297 = vmatprep.mubr.msk.bf16.mxu0 (!%p2160_p8), %vm2464_vm8, %v2463_v18 }
 0x880   : > { %2295 = vmatprep.subr.bf16.mxu0 (!%p2160_p8), %v2463_v18 }
 0x883   : > { %2296 = vmatpush3.bf16.msra.mxu0 (!%p2160_p8), %v2402_v19 }
 0x951   : > { %v1653_v45 = vpop.f32.mrb[20].mxu0 }
 0x952   : > { %v1654_v46 = vadd.f32 %v2148_v44, %v1653_v45  ;;  %v2279_v47 = vpop.f32.mrb[21].mxu0 }
 0x953   : > { %v1656_v48 = vpop.f32.mrb[22].mxu0 }
 0x954   : > { %v1660_v49 = vmul.f32 0.044715, %v1654_v46  ;;  %v2280_v50 = vpop.f32.mrb[23].mxu0  ;;  %v1659_v22 = vmul.f32 0.5, %v1654_v46 }
 0x956   : > { %v1661_v51 = vmul.f32 %v1660_v49, %v1654_v46 }
 0x958   : > { %v1662_v52 = vmul.f32 %v1661_v51, %v1654_v46 }
 0x95a   : > { %v1663_v53 = vadd.f32 %v1662_v52, %v1654_v46 }
 0x95c   : > { %v1664_v54 = vmul.f32 0.7978846, %v1663_v53 }
 0x95e   : > { %2397 = vtanh.f32 %v1664_v54 }
 0x968   : > { %v2398_v55 = vpop.eup %2397 }
 0x969   : > { %v1666_v56 = vadd.f32 1.0, %v2398_v55 }
 0x96b   : > { %v1667_v57 = vmul.f32 %v1666_v56, %v1659_v22 }
 0x96d   : > { %v1668_v58 = vpack.c.bf16 %v1667_v57, %v1667_v57 }
 0x96f   : > { %2290 = vmatmul.mubr.msk.bf16.vlgmr.msra.gmra.mrb[20].mxu1 %vm1708_vm7, %v1668_v58 }
 0x970   : > { %2305 = vmatprep.mubr.msk.bf16.mxu1 (!%p2160_p8), %vm2464_vm8, %v2463_v18  ;;  %2302 = vmatpush3.bf16.msra.mxu1 (!%p2160_p8), %v2403_v21 }
 0x971   : > { %2303 = vmatprep.subr.bf16.mxu1 (!%p2160_p8), %v2463_v18 }
 0x974   : > { %2304 = vmatpush3.bf16.msra.mxu1 (!%p2160_p8), %v2404_v23 }
 0xa42   : > { %v1746_v60 = vpop.f32.mrb[20].mxu1 }
 0xa43   : > { %v1747_v61 = vadd.f32 %v2152_v59, %v1746_v60  ;;  %v2291_v62 = vpop.f32.mrb[21].mxu1 }
 0xa44   : > { %v1749_v63 = vpop.f32.mrb[22].mxu1 }
 0xa45   : > { %v2292_v0 = vpop.f32.mrb[23].mxu1  ;;  %v1752_v1 = vadd.f32 %v1747_v61, %v1591_v39 }
 0xa47   : > { %v1755_v2 = vsel %vm981_vm2, %v1752_v1, 0.0 }
 0xa48   : > { %1756 = vadd.xlane.f32.xlu0 %v1755_v2 }
 0xad5   : > { %v1757_v3 = vpop.xlane.xlu0 %1756 }
 0xad6   : > { %v1758_v4 = vmul.f32 0.03125, %v1757_v3 }
 0xad8   : > { %v1759_v5 = vsub.f32 %v1752_v1, %v1758_v4 }
 0xada   : > { %v1760_v6 = vmul.f32 %v1759_v5, %v1759_v5 }
 0xadc   : > { %v1761_v7 = vsel %vm981_vm2, %v1760_v6, 0.0 }
 0xadd   : > { %1762 = vadd.xlane.f32.xlu0 %v1761_v7 }
 0xb6a   : > { %v1763_v8 = vpop.xlane.xlu0 %1762 }
 0xb6b   : > { %v1764_v9 = vmul.f32 0.03125, %v1763_v8 }
 0xb6d   : > { %v1765_v10 = vadd.f32 1e-12, %v1764_v9 }
 0xb6f   : > { %2399 = vrsqrt.f32 %v1765_v10 }
 0xb79   : > { %v2400_v11 = vpop.eup %2399 }
 0xb7a   : > { %v1767_v13 = vmul.f32 %v2400_v11, %v1759_v5  ;;  %1786 = sbr.rel (%p2160_p8) target bundleno = 3388 (0xd3c), region = 116 }
 0xb7c   : > { %v1774_v15 = vmul.f32 %v2158_v12, %v1767_v13 }
 0xb7e   : > { %v1781_v16 = vadd.f32 %v2159_v14, %v1774_v15 }
 0xb80   : > { %1782 = vst.msk [vmem:[#allocation2] sm:$0xff] %vm981_vm2, %v1781_v16  ;;  %v1787_v20 = vpack.c.bf16 (!%p2160_p8), %v1781_v16, %v1781_v16 }
 0xb82   : > { %2298 = vmatmul.mubr.msk.bf16.vlgmr.msra.gmra.mrb[0].mxu0 %vm981_vm2, %v1787_v20 }
 0xc55   : > { %v1842_v26 = vpop.f32.mrb[0].mxu0 }
 0xc56   : > { %v1843_v27 = vadd.f32 %v1842_v26, %v1792_v25  ;;  %v2299_v28 = vpop.f32.mrb[1].mxu0 }
 0xc57   : > { %v1845_v29 = vpop.f32.mrb[2].mxu0 }
 0xc58   : > { %2405 = vtanh.f32 %v1843_v27  ;;  %v2300_v30 = vpop.f32.mrb[3].mxu0 }
 0xc62   : > { %v2406_v24 = vpop.eup %2405 }
 0xc63   : > { %v1849_v31 = vpack.c.bf16 %v2406_v24, %v2406_v24 }
 0xc65   : > { %2306 = vmatmul.mubr.msk.bf16.vlgmr.msra.gmra.mrb[0].mxu1 %vm981_vm2, %v1849_v31 }
 0xd38   : > { %v1904_v34 = vpop.f32.mrb[0].mxu1 }
 0xd39   : > { %v1905_v35 = vadd.f32 %v1904_v34, %v1854_v33  ;;  %v2307_v36 = vpop.f32.mrb[1].mxu1 }
 0xd3a   : > { %v1907_v37 = vpop.f32.mrb[2].mxu1 }
 0xd3b   : > { %1911 = vst.msk [vmem:[%s913_s13] sm:$0x1] %vm1910_vm9, %v1905_v35  ;;  %v2308_v38 = vpop.f32.mrb[3].mxu1 }
 0xd3c PF: > { %s2969_s4 = sld [smem:[#allocation7_spill]]  ;;  %s2970_s29 = sld [smem:[#allocation5_spill]] }
 0xd3d   : > { %s2971_s30 = sld [smem:[#allocation6_spill]]  ;;  %s2973_s0 = sld [smem:[#allocation9_spill]] }
 0xd42   : > { %s34_s23 = sadd.s32 1, %s2969_s4   ;;  %s2972_s4 = sld [smem:[#allocation8_spill]] }
 0xd43   : > { %p31_p9 = scmp.ge.s32.totalorder %s34_s23, 6  }
 0xd45   :  { %33 = sbr.rel (!%p31_p9) target bundleno = 17 (0x11), region = 188 }

</bundles_post_ra>
